<compile_context>
chip_gen: v5e
topology: v5e:2x2
jax: 0.10.0
libtpu: 0.0.40
codegen_flags: <defaults>
</compile_context>

<pallas_src>
import jax
import jax.numpy as jnp
from jax.experimental import pallas as pl
from jax.experimental.pallas import tpu as pltpu

LANE = 128                 # pad every feature dim to one full vreg lane width
K1, STRIDE, PAD = 3, 2, 1  # encoder conv hyper-parameters (assumed, see TODO)


# ----------------------------------------------------------------------------
# Fused kernel: everything after conv1-im2col happens here, fully VMEM-resident
# ----------------------------------------------------------------------------
def _dvn_fused_kernel(patches_ref, w1_ref, b1_ref, w2_ref, b2_ref,
                      wenc_ref, benc_ref, *rest):
    """rest = critic (w, b) refs ..., out_ref, conv2-patch VMEM scratch."""
    critic_refs, out_ref, p2_scr = rest[:-2], rest[-2], rest[-1]
    f32, bf16 = jnp.float32, jnp.bfloat16

    B = out_ref.shape[0]
    c1p = w1_ref.shape[1]                                   # padded c1 (=128)
    s1 = int(round((patches_ref.shape[0] // B) ** 0.5))     # conv1 out: s1 x s1
    s2 = s1 // 2                                            # conv2 out: s2 x s2

    # ---- conv1: one matmul over the pre-built im2col patches --------------
    # rows ordered (spatial p1, batch b): row = p1*B + b
    h1 = jnp.maximum(
        jnp.dot(patches_ref[...], w1_ref[...], preferred_element_type=f32)
        + b1_ref[...], 0.0)                                 # (s1*s1*B, c1p) f32

    # ---- conv2 im2col: static contiguous row slices -> VMEM scratch -------
    zero_blk = jnp.zeros((B, c1p), f32)
    for io in range(s2):
        for jo in range(s2):
            taps = []
            for kh in range(K1):
                for kw in range(K1):
                    i1 = STRIDE * io + kh - PAD
                    j1 = STRIDE * jo + kw - PAD
                    if 0 <= i1 < s1 and 0 <= j1 < s1:
                        p1 = i1 * s1 + j1
                        taps.append(h1[p1 * B:(p1 + 1) * B, :])
                    else:
                        taps.append(zero_blk)               # zero-padding tap
            pos = io * s2 + jo
            p2_scr[pos * B:(pos + 1) * B, :] = jnp.concatenate(taps, axis=1)

    # ---- conv2: ONE weight matmul over the assembled patch matrix ---------
    h2 = jnp.maximum(
        jnp.dot(p2_scr[...].astype(bf16), w2_ref[...],
                preferred_element_type=f32)
        + b2_ref[...], 0.0)                                 # (s2*s2*B, c2p) f32

    # ---- flatten (NCHW order folded into wenc) + encoder linear -----------
    zcat = jnp.concatenate(
        [h2[p * B:(p + 1) * B, :] for p in range(s2 * s2)], axis=1)
    z = jnp.maximum(
        jnp.dot(zcat.astype(bf16), wenc_ref[...], preferred_element_type=f32)
        + benc_ref[...], 0.0)                               # (B, 128)

    # ---- critic MLP: ReLU hidden layers, linear (lane-padded) value head --
    h = z
    n_layers = len(critic_refs) // 2
    for i in range(n_layers):
        w = critic_refs[2 * i][...]
        b = critic_refs[2 * i + 1][...]
        h = jnp.dot(h.astype(bf16), w, preferred_element_type=f32) + b
        if i < n_layers - 1:
            h = jnp.maximum(h, 0.0)
    out_ref[...] = h                                        # (B, 128) lane-dense


# ----------------------------------------------------------------------------
# Wrapper-side input formatting (im2col for conv1 only) + the single call
# ----------------------------------------------------------------------------
def _im2col(x_nhwc, k=K1, stride=STRIDE, pad=PAD):
    """(B,H,W,C) -> (B,Ho,Wo,k*k*C), tap-major (kh,kw), channel-minor."""
    b, h, w, c = x_nhwc.shape
    xp = jnp.pad(x_nhwc, ((0, 0), (pad, pad), (pad, pad), (0, 0)))
    ho = (h + 2 * pad - k) // stride + 1
    wo = (w + 2 * pad - k) // stride + 1
    cols = [xp[:, kh:kh + ho * stride:stride, kw:kw + wo * stride:stride, :]
            for kh in range(k) for kw in range(k)]
    return jnp.concatenate(cols, axis=-1)


@jax.jit
def dvn_forward(x_nchw, kin):
    B = x_nchw.shape[0]
    x = jnp.transpose(x_nchw, (0, 2, 3, 1))            # NCHW -> NHWC (input only)
    pt = _im2col(x)                                    # (B, s1, s1, 9*Cin)
    s1 = pt.shape[1]
    # (spatial-major, batch-minor) rows: row = (i1*s1 + j1)*B + b
    patches = jnp.transpose(pt, (1, 2, 0, 3)).reshape(s1 * s1 * B, -1)
    patches = patches.astype(jnp.bfloat16)

    args = [patches, kin["w1"], kin["b1"], kin["w2"], kin["b2"],
            kin["wenc"], kin["benc"], *kin["critic"]]
    c1p = kin["w1"].shape[1]
    n_sp2 = (s1 // 2) ** 2
    out = pl.pallas_call(
        _dvn_fused_kernel,
        out_shape=jax.ShapeDtypeStruct((B, LANE), jnp.float32),
        in_specs=[pl.BlockSpec(memory_space=pltpu.MemorySpace.VMEM)] * len(args),
        out_specs=pl.BlockSpec(memory_space=pltpu.MemorySpace.VMEM),
        scratch_shapes=[pltpu.VMEM((n_sp2 * B, K1 * K1 * c1p), jnp.float32)],
        compiler_params=pltpu.CompilerParams(vmem_limit_bytes=32 * 1024 * 1024),
    )(*args)
    return out[:, :1]                                  # critic value, shape (B, 1)


# ----------------------------------------------------------------------------
# Parameter init (PyTorch-default-style uniform) and kernel-ready packing
# ----------------------------------------------------------------------------
def _uniform(key, shape, fan_in):
    lim = 1.0 / float(fan_in) ** 0.5
    return jax.random.uniform(key, shape, jnp.float32, -lim, lim)


def init_params(key, in_ch, hidden_channels, spatial, embed_dim, mlp_hidden_dims):
    c1, c2 = hidden_channels
    conv_flat = c2 * (spatial // 4) * (spatial // 4)
    dims = [embed_dim] + list(mlp_hidden_dims) + [1]
    n_critic = len(dims) - 1
    ks = jax.random.split(key, 6 + 2 * n_critic)
    p = {
        "w1": _uniform(ks[0], (K1, K1, in_ch, c1), K1 * K1 * in_ch),   # HWIO
        "b1": _uniform(ks[1], (c1,), K1 * K1 * in_ch),
        "w2": _uniform(ks[2], (K1, K1, c1, c2), K1 * K1 * c1),
        "b2": _uniform(ks[3], (c2,), K1 * K1 * c1),
        "wenc": _uniform(ks[4], (conv_flat, embed_dim), conv_flat),  # NCHW-flat rows
        "benc": _uniform(ks[5], (embed_dim,), conv_flat),
        "critic": [],
    }
    for i in range(n_critic):
        w = _uniform(ks[6 + 2 * i], (dims[i], dims[i + 1]), dims[i])
        b = _uniform(ks[7 + 2 * i], (dims[i + 1],), dims[i])
        p["critic"].append((w, b))
    return p


def prepare_kernel_inputs(p):
    """Pack / zero-pad / bf16-cast parameters for the fused kernel.

    Batch-independent: feature dims padded to 128 lanes, conv2 weight packed
    tap-major, PyTorch NCHW flatten folded into the encoder-linear weight.
    """
    f32, bf16 = jnp.float32, jnp.bfloat16
    c1 = p["b1"].shape[0]
    c2 = p["b2"].shape[0]
    in_ch = p["w1"].shape[2]
    emb = p["benc"].shape[0]
    n_sp = p["wenc"].shape[0] // c2                    # conv2 spatial positions
    assert max(c1, c2, emb) <= LANE

    w1 = jnp.pad(p["w1"].reshape(K1 * K1 * in_ch, c1),
                 ((0, 0), (0, LANE - c1))).astype(bf16)
    b1 = jnp.pad(p["b1"], (0, LANE - c1)).reshape(1, LANE).astype(f32)

    w2 = jnp.pad(p["w2"].reshape(K1 * K1, c1, c2),
                 ((0, 0), (0, LANE - c1), (0, LANE - c2)))
    w2 = w2.reshape(K1 * K1 * LANE, LANE).astype(bf16)
    b2 = jnp.pad(p["b2"], (0, LANE - c2)).reshape(1, LANE).astype(f32)

    # Fold the NCHW flatten (row index c*n_sp + p2) into (p2-block, channel) rows.
    we = jnp.transpose(p["wenc"].reshape(c2, n_sp, emb), (1, 0, 2))   # (p2, c, d)
    we = jnp.pad(we, ((0, 0), (0, LANE - c2), (0, LANE - emb)))
    wenc = we.reshape(n_sp * LANE, LANE).astype(bf16)
    benc = jnp.pad(p["benc"], (0, LANE - emb)).reshape(1, LANE).astype(f32)

    critic = []
    for w, b in p["critic"]:
        din, dout = w.shape
        assert max(din, dout) <= LANE           # cap padding at 128 (v5e MXU)
        critic.append(jnp.pad(w, ((0, LANE - din), (0, LANE - dout))).astype(bf16))
        critic.append(jnp.pad(b, (0, LANE - dout)).reshape(1, LANE).astype(f32))

    return {"w1": w1, "b1": b1, "w2": w2, "b2": b2,
            "wenc": wenc, "benc": benc, "critic": critic}


# ----------------------------------------------------------------------------
# Pure-JAX reference (same assumed architecture, same bf16-in / f32-acc matmuls)
# ----------------------------------------------------------------------------
def _mm_bf16(a, w):
    return jnp.dot(a.astype(jnp.bfloat16), w.astype(jnp.bfloat16),
                   preferred_element_type=jnp.float32)


def dvn_reference(x_nchw, p):
    x = jnp.transpose(x_nchw, (0, 2, 3, 1))
    B, H = x.shape[0], x.shape[1]
    c1, c2 = p["b1"].shape[0], p["b2"].shape[0]
    pt1 = _im2col(x)                                          # (B,8,8,9*Cin)
    h1 = jnp.maximum(_mm_bf16(pt1.reshape(-1, pt1.shape[-1]),
                              p["w1"].reshape(-1, c1)) + p["b1"], 0.0)
    h1 = h1.reshape(B, H // 2, H // 2, c1)
    pt2 = _im2col(h1)                                         # (B,4,4,9*c1)
    h2 = jnp.maximum(_mm_bf16(pt2.reshape(-1, pt2.shape[-1]),
                              p["w2"].reshape(-1, c2)) + p["b2"], 0.0)
    h2 = h2.reshape(B, H // 4, H // 4, c2)
    flat = jnp.transpose(h2, (0, 3, 1, 2)).reshape(B, -1)     # nn.Flatten (NCHW)
    z = jnp.maximum(_mm_bf16(flat, p["wenc"]) + p["benc"], 0.0)
    out = z
    for i, (w, b) in enumerate(p["critic"]):
        out = _mm_bf16(out, w) + b
        if i < len(p["critic"]) - 1:
            out = jnp.maximum(out, 0.0)
    return out


# ----------------------------------------------------------------------------
if __name__ == "__main__":
    BATCH, IN_CH, HW = 2, 4, 16
    HIDDEN_CHANNELS = (32, 64)      # encoder conv channels
    EMBED = 32                      # encoder.linear_out_dim
    MLP_HIDDEN = (64, 64)           # DVN mlp_hidden_dims

    key = jax.random.PRNGKey(0)
    k_x, k_p = jax.random.split(key)
    x = jax.random.normal(k_x, (BATCH, IN_CH, HW, HW), jnp.float32)   # NCHW

    params = init_params(k_p, IN_CH, HIDDEN_CHANNELS, HW, EMBED, MLP_HIDDEN)
    kin = prepare_kernel_inputs(params)

    v = dvn_forward(x, kin)
    jax.block_until_ready(v)
    assert v.shape == (BATCH, 1)

    v_ref = dvn_reference(x, params)
    assert jnp.all(jnp.isfinite(v))
    # Both paths use bf16 MXU inputs with f32 accumulation, so the tolerance can
    # be tight (only accumulation-order differences remain).
    assert jnp.allclose(v, v_ref, rtol=1e-3, atol=1e-3), (v, v_ref)
    print("KERNEL_OK")
</pallas_src>

<mosaic_0001>
module attributes {stable_mosaic.version = 11 : i64} {
  func.func @_dvn_fused_kernel(%arg0: memref<128x36xbf16, #tpu.memory_space<vmem>>, %arg1: memref<36x128xbf16, #tpu.memory_space<vmem>>, %arg2: memref<1x128xf32, #tpu.memory_space<vmem>>, %arg3: memref<1152x128xbf16, #tpu.memory_space<vmem>>, %arg4: memref<1x128xf32, #tpu.memory_space<vmem>>, %arg5: memref<2048x128xbf16, #tpu.memory_space<vmem>>, %arg6: memref<1x128xf32, #tpu.memory_space<vmem>>, %arg7: memref<128x128xbf16, #tpu.memory_space<vmem>>, %arg8: memref<1x128xf32, #tpu.memory_space<vmem>>, %arg9: memref<128x128xbf16, #tpu.memory_space<vmem>>, %arg10: memref<1x128xf32, #tpu.memory_space<vmem>>, %arg11: memref<128x128xbf16, #tpu.memory_space<vmem>>, %arg12: memref<1x128xf32, #tpu.memory_space<vmem>>, %arg13: memref<2x128xf32, #tpu.memory_space<vmem>>, %arg14: memref<32x1152xf32, #tpu.memory_space<vmem>>) attributes {dimension_semantics = [], scalar_prefetch = 0 : i64, scratch_operands = 1 : i64, tpu.core_type = #tpu.core_type<tc>} {
    %c0 = arith.constant 0 : index
    %c0_0 = arith.constant 0 : index
    %0 = vector.load %arg0[%c0, %c0_0] : memref<128x36xbf16, #tpu.memory_space<vmem>>, vector<128x36xbf16>
    %c0_1 = arith.constant 0 : index
    %c0_2 = arith.constant 0 : index
    %1 = vector.load %arg1[%c0_1, %c0_2] : memref<36x128xbf16, #tpu.memory_space<vmem>>, vector<36x128xbf16>
    %cst = arith.constant dense<0.000000e+00> : vector<128x128xf32>
    %2 = tpu.matmul %0, %1, %cst {dimension_numbers = #tpu.dot_dimension_numbers<[1], [0], [0], [1], [0, 0, 1, 1], [], []>} : vector<128x36xbf16>, vector<36x128xbf16>, vector<128x128xf32> -> vector<128x128xf32>
    %c0_3 = arith.constant 0 : index
    %c0_4 = arith.constant 0 : index
    %3 = vector.load %arg2[%c0_3, %c0_4] : memref<1x128xf32, #tpu.memory_space<vmem>>, vector<1x128xf32>
    %4 = vector.broadcast %3 : vector<1x128xf32> to vector<128x128xf32>
    %5 = arith.addf %2, %4 : vector<128x128xf32>
    %cst_5 = arith.constant 0.000000e+00 : f32
    %6 = vector.broadcast %cst_5 : f32 to vector<128x128xf32>
    %7 = arith.maximumf %5, %6 : vector<128x128xf32>
    %cst_6 = arith.constant 0.000000e+00 : f32
    %8 = vector.broadcast %cst_6 : f32 to vector<2x128xf32>
    %9 = vector.extract_strided_slice %7 {offsets = [0, 0], sizes = [2, 128], strides = [1, 1]} : vector<128x128xf32> to vector<2x128xf32>
    %10 = vector.extract_strided_slice %7 {offsets = [2, 0], sizes = [2, 128], strides = [1, 1]} : vector<128x128xf32> to vector<2x128xf32>
    %11 = vector.extract_strided_slice %7 {offsets = [16, 0], sizes = [2, 128], strides = [1, 1]} : vector<128x128xf32> to vector<2x128xf32>
    %12 = vector.extract_strided_slice %7 {offsets = [18, 0], sizes = [2, 128], strides = [1, 1]} : vector<128x128xf32> to vector<2x128xf32>
    %13 = tpu.concatenate %8, %8, %8, %8, %9, %10, %8, %11, %12 in 1 : vector<2x128xf32>, vector<2x128xf32>, vector<2x128xf32>, vector<2x128xf32>, vector<2x128xf32>, vector<2x128xf32>, vector<2x128xf32>, vector<2x128xf32>, vector<2x128xf32> -> vector<2x1152xf32>
    %c0_7 = arith.constant 0 : index
    %c0_8 = arith.constant 0 : index
    %14 = vector.load %arg14[%c0_7, %c0_8] : memref<32x1152xf32, #tpu.memory_space<vmem>>, vector<2x1152xf32>
    tpu.vector_store %arg14[%c0_7, %c0_8], %13 {strides = array<i32>} : memref<32x1152xf32, #tpu.memory_space<vmem>>, vector<2x1152xf32>,
    %15 = vector.extract_strided_slice %7 {offsets = [2, 0], sizes = [2, 128], strides = [1, 1]} : vector<128x128xf32> to vector<2x128xf32>
    %16 = vector.extract_strided_slice %7 {offsets = [4, 0], sizes = [2, 128], strides = [1, 1]} : vector<128x128xf32> to vector<2x128xf32>
    %17 = vector.extract_strided_slice %7 {offsets = [6, 0], sizes = [2, 128], strides = [1, 1]} : vector<128x128xf32> to vector<2x128xf32>
    %18 = vector.extract_strided_slice %7 {offsets = [18, 0], sizes = [2, 128], strides = [1, 1]} : vector<128x128xf32> to vector<2x128xf32>
    %19 = vector.extract_strided_slice %7 {offsets = [20, 0], sizes = [2, 128], strides = [1, 1]} : vector<128x128xf32> to vector<2x128xf32>
    %20 = vector.extract_strided_slice %7 {offsets = [22, 0], sizes = [2, 128], strides = [1, 1]} : vector<128x128xf32> to vector<2x128xf32>
    %21 = tpu.concatenate %8, %8, %8, %15, %16, %17, %18, %19, %20 in 1 : vector<2x128xf32>, vector<2x128xf32>, vector<2x128xf32>, vector<2x128xf32>, vector<2x128xf32>, vector<2x128xf32>, vector<2x128xf32>, vector<2x128xf32>, vector<2x128xf32> -> vector<2x1152xf32>
    %c2 = arith.constant 2 : index
    %c0_9 = arith.constant 0 : index
    %22 = vector.load %arg14[%c2, %c0_9] : memref<32x1152xf32, #tpu.memory_space<vmem>>, vector<2x1152xf32>
    tpu.vector_store %arg14[%c2, %c0_9], %21 {strides = array<i32>} : memref<32x1152xf32, #tpu.memory_space<vmem>>, vector<2x1152xf32>,
    %23 = vector.extract_strided_slice %7 {offsets = [6, 0], sizes = [2, 128], strides = [1, 1]} : vector<128x128xf32> to vector<2x128xf32>
    %24 = vector.extract_strided_slice %7 {offsets = [8, 0], sizes = [2, 128], strides = [1, 1]} : vector<128x128xf32> to vector<2x128xf32>
    %25 = vector.extract_strided_slice %7 {offsets = [10, 0], sizes = [2, 128], strides = [1, 1]} : vector<128x128xf32> to vector<2x128xf32>
    %26 = vector.extract_strided_slice %7 {offsets = [22, 0], sizes = [2, 128], strides = [1, 1]} : vector<128x128xf32> to vector<2x128xf32>
    %27 = vector.extract_strided_slice %7 {offsets = [24, 0], sizes = [2, 128], strides = [1, 1]} : vector<128x128xf32> to vector<2x128xf32>
    %28 = vector.extract_strided_slice %7 {offsets = [26, 0], sizes = [2, 128], strides = [1, 1]} : vector<128x128xf32> to vector<2x128xf32>
    %29 = tpu.concatenate %8, %8, %8, %23, %24, %25, %26, %27, %28 in 1 : vector<2x128xf32>, vector<2x128xf32>, vector<2x128xf32>, vector<2x128xf32>, vector<2x128xf32>, vector<2x128xf32>, vector<2x128xf32>, vector<2x128xf32>, vector<2x128xf32> -> vector<2x1152xf32>
    %c4 = arith.constant 4 : index
    %c0_10 = arith.constant 0 : index
    %30 = vector.load %arg14[%c4, %c0_10] : memref<32x1152xf32, #tpu.memory_space<vmem>>, vector<2x1152xf32>
    tpu.vector_store %arg14[%c4, %c0_10], %29 {strides = array<i32>} : memref<32x1152xf32, #tpu.memory_space<vmem>>, vector<2x1152xf32>,
    %31 = vector.extract_strided_slice %7 {offsets = [10, 0], sizes = [2, 128], strides = [1, 1]} : vector<128x128xf32> to vector<2x128xf32>
    %32 = vector.extract_strided_slice %7 {offsets = [12, 0], sizes = [2, 128], strides = [1, 1]} : vector<128x128xf32> to vector<2x128xf32>
    %33 = vector.extract_strided_slice %7 {offsets = [14, 0], sizes = [2, 128], strides = [1, 1]} : vector<128x128xf32> to vector<2x128xf32>
    %34 = vector.extract_strided_slice %7 {offsets = [26, 0], sizes = [2, 128], strides = [1, 1]} : vector<128x128xf32> to vector<2x128xf32>
    %35 = vector.extract_strided_slice %7 {offsets = [28, 0], sizes = [2, 128], strides = [1, 1]} : vector<128x128xf32> to vector<2x128xf32>
    %36 = vector.extract_strided_slice %7 {offsets = [30, 0], sizes = [2, 128], strides = [1, 1]} : vector<128x128xf32> to vector<2x128xf32>
    %37 = tpu.concatenate %8, %8, %8, %31, %32, %33, %34, %35, %36 in 1 : vector<2x128xf32>, vector<2x128xf32>, vector<2x128xf32>, vector<2x128xf32>, vector<2x128xf32>, vector<2x128xf32>, vector<2x128xf32>, vector<2x128xf32>, vector<2x128xf32> -> vector<2x1152xf32>
    %c6 = arith.constant 6 : index
    %c0_11 = arith.constant 0 : index
    %38 = vector.load %arg14[%c6, %c0_11] : memref<32x1152xf32, #tpu.memory_space<vmem>>, vector<2x1152xf32>
    tpu.vector_store %arg14[%c6, %c0_11], %37 {strides = array<i32>} : memref<32x1152xf32, #tpu.memory_space<vmem>>, vector<2x1152xf32>,
    %39 = vector.extract_strided_slice %7 {offsets = [16, 0], sizes = [2, 128], strides = [1, 1]} : vector<128x128xf32> to vector<2x128xf32>
    %40 = vector.extract_strided_slice %7 {offsets = [18, 0], sizes = [2, 128], strides = [1, 1]} : vector<128x128xf32> to vector<2x128xf32>
    %41 = vector.extract_strided_slice %7 {offsets = [32, 0], sizes = [2, 128], strides = [1, 1]} : vector<128x128xf32> to vector<2x128xf32>
    %42 = vector.extract_strided_slice %7 {offsets = [34, 0], sizes = [2, 128], strides = [1, 1]} : vector<128x128xf32> to vector<2x128xf32>
    %43 = vector.extract_strided_slice %7 {offsets = [48, 0], sizes = [2, 128], strides = [1, 1]} : vector<128x128xf32> to vector<2x128xf32>
    %44 = vector.extract_strided_slice %7 {offsets = [50, 0], sizes = [2, 128], strides = [1, 1]} : vector<128x128xf32> to vector<2x128xf32>
    %45 = tpu.concatenate %8, %39, %40, %8, %41, %42, %8, %43, %44 in 1 : vector<2x128xf32>, vector<2x128xf32>, vector<2x128xf32>, vector<2x128xf32>, vector<2x128xf32>, vector<2x128xf32>, vector<2x128xf32>, vector<2x128xf32>, vector<2x128xf32> -> vector<2x1152xf32>
    %c8 = arith.constant 8 : index
    %c0_12 = arith.constant 0 : index
    %46 = vector.load %arg14[%c8, %c0_12] : memref<32x1152xf32, #tpu.memory_space<vmem>>, vector<2x1152xf32>
    tpu.vector_store %arg14[%c8, %c0_12], %45 {strides = array<i32>} : memref<32x1152xf32, #tpu.memory_space<vmem>>, vector<2x1152xf32>,
    %47 = vector.extract_strided_slice %7 {offsets = [18, 0], sizes = [2, 128], strides = [1, 1]} : vector<128x128xf32> to vector<2x128xf32>
    %48 = vector.extract_strided_slice %7 {offsets = [20, 0], sizes = [2, 128], strides = [1, 1]} : vector<128x128xf32> to vector<2x128xf32>
    %49 = vector.extract_strided_slice %7 {offsets = [22, 0], sizes = [2, 128], strides = [1, 1]} : vector<128x128xf32> to vector<2x128xf32>
    %50 = vector.extract_strided_slice %7 {offsets = [34, 0], sizes = [2, 128], strides = [1, 1]} : vector<128x128xf32> to vector<2x128xf32>
    %51 = vector.extract_strided_slice %7 {offsets = [36, 0], sizes = [2, 128], strides = [1, 1]} : vector<128x128xf32> to vector<2x128xf32>
    %52 = vector.extract_strided_slice %7 {offsets = [38, 0], sizes = [2, 128], strides = [1, 1]} : vector<128x128xf32> to vector<2x128xf32>
    %53 = vector.extract_strided_slice %7 {offsets = [50, 0], sizes = [2, 128], strides = [1, 1]} : vector<128x128xf32> to vector<2x128xf32>
    %54 = vector.extract_strided_slice %7 {offsets = [52, 0], sizes = [2, 128], strides = [1, 1]} : vector<128x128xf32> to vector<2x128xf32>
    %55 = vector.extract_strided_slice %7 {offsets = [54, 0], sizes = [2, 128], strides = [1, 1]} : vector<128x128xf32> to vector<2x128xf32>
    %56 = tpu.concatenate %47, %48, %49, %50, %51, %52, %53, %54, %55 in 1 : vector<2x128xf32>, vector<2x128xf32>, vector<2x128xf32>, vector<2x128xf32>, vector<2x128xf32>, vector<2x128xf32>, vector<2x128xf32>, vector<2x128xf32>, vector<2x128xf32> -> vector<2x1152xf32>
    %c10 = arith.constant 10 : index
    %c0_13 = arith.constant 0 : index
    %57 = vector.load %arg14[%c10, %c0_13] : memref<32x1152xf32, #tpu.memory_space<vmem>>, vector<2x1152xf32>
    tpu.vector_store %arg14[%c10, %c0_13], %56 {strides = array<i32>} : memref<32x1152xf32, #tpu.memory_space<vmem>>, vector<2x1152xf32>,
    %58 = vector.extract_strided_slice %7 {offsets = [22, 0], sizes = [2, 128], strides = [1, 1]} : vector<128x128xf32> to vector<2x128xf32>
    %59 = vector.extract_strided_slice %7 {offsets = [24, 0], sizes = [2, 128], strides = [1, 1]} : vector<128x128xf32> to vector<2x128xf32>
    %60 = vector.extract_strided_slice %7 {offsets = [26, 0], sizes = [2, 128], strides = [1, 1]} : vector<128x128xf32> to vector<2x128xf32>
    %61 = vector.extract_strided_slice %7 {offsets = [38, 0], sizes = [2, 128], strides = [1, 1]} : vector<128x128xf32> to vector<2x128xf32>
    %62 = vector.extract_strided_slice %7 {offsets = [40, 0], sizes = [2, 128], strides = [1, 1]} : vector<128x128xf32> to vector<2x128xf32>
    %63 = vector.extract_strided_slice %7 {offsets = [42, 0], sizes = [2, 128], strides = [1, 1]} : vector<128x128xf32> to vector<2x128xf32>
    %64 = vector.extract_strided_slice %7 {offsets = [54, 0], sizes = [2, 128], strides = [1, 1]} : vector<128x128xf32> to vector<2x128xf32>
    %65 = vector.extract_strided_slice %7 {offsets = [56, 0], sizes = [2, 128], strides = [1, 1]} : vector<128x128xf32> to vector<2x128xf32>
    %66 = vector.extract_strided_slice %7 {offsets = [58, 0], sizes = [2, 128], strides = [1, 1]} : vector<128x128xf32> to vector<2x128xf32>
    %67 = tpu.concatenate %58, %59, %60, %61, %62, %63, %64, %65, %66 in 1 : vector<2x128xf32>, vector<2x128xf32>, vector<2x128xf32>, vector<2x128xf32>, vector<2x128xf32>, vector<2x128xf32>, vector<2x128xf32>, vector<2x128xf32>, vector<2x128xf32> -> vector<2x1152xf32>
    %c12 = arith.constant 12 : index
    %c0_14 = arith.constant 0 : index
    %68 = vector.load %arg14[%c12, %c0_14] : memref<32x1152xf32, #tpu.memory_space<vmem>>, vector<2x1152xf32>
    tpu.vector_store %arg14[%c12, %c0_14], %67 {strides = array<i32>} : memref<32x1152xf32, #tpu.memory_space<vmem>>, vector<2x1152xf32>,
    %69 = vector.extract_strided_slice %7 {offsets = [26, 0], sizes = [2, 128], strides = [1, 1]} : vector<128x128xf32> to vector<2x128xf32>
    %70 = vector.extract_strided_slice %7 {offsets = [28, 0], sizes = [2, 128], strides = [1, 1]} : vector<128x128xf32> to vector<2x128xf32>
    %71 = vector.extract_strided_slice %7 {offsets = [30, 0], sizes = [2, 128], strides = [1, 1]} : vector<128x128xf32> to vector<2x128xf32>
    %72 = vector.extract_strided_slice %7 {offsets = [42, 0], sizes = [2, 128], strides = [1, 1]} : vector<128x128xf32> to vector<2x128xf32>
    %73 = vector.extract_strided_slice %7 {offsets = [44, 0], sizes = [2, 128], strides = [1, 1]} : vector<128x128xf32> to vector<2x128xf32>
    %74 = vector.extract_strided_slice %7 {offsets = [46, 0], sizes = [2, 128], strides = [1, 1]} : vector<128x128xf32> to vector<2x128xf32>
    %75 = vector.extract_strided_slice %7 {offsets = [58, 0], sizes = [2, 128], strides = [1, 1]} : vector<128x128xf32> to vector<2x128xf32>
    %76 = vector.extract_strided_slice %7 {offsets = [60, 0], sizes = [2, 128], strides = [1, 1]} : vector<128x128xf32> to vector<2x128xf32>
    %77 = vector.extract_strided_slice %7 {offsets = [62, 0], sizes = [2, 128], strides = [1, 1]} : vector<128x128xf32> to vector<2x128xf32>
    %78 = tpu.concatenate %69, %70, %71, %72, %73, %74, %75, %76, %77 in 1 : vector<2x128xf32>, vector<2x128xf32>, vector<2x128xf32>, vector<2x128xf32>, vector<2x128xf32>, vector<2x128xf32>, vector<2x128xf32>, vector<2x128xf32>, vector<2x128xf32> -> vector<2x1152xf32>
    %c14 = arith.constant 14 : index
    %c0_15 = arith.constant 0 : index
    %79 = vector.load %arg14[%c14, %c0_15] : memref<32x1152xf32, #tpu.memory_space<vmem>>, vector<2x1152xf32>
    tpu.vector_store %arg14[%c14, %c0_15], %78 {strides = array<i32>} : memref<32x1152xf32, #tpu.memory_space<vmem>>, vector<2x1152xf32>,
    %80 = vector.extract_strided_slice %7 {offsets = [48, 0], sizes = [2, 128], strides = [1, 1]} : vector<128x128xf32> to vector<2x128xf32>
    %81 = vector.extract_strided_slice %7 {offsets = [50, 0], sizes = [2, 128], strides = [1, 1]} : vector<128x128xf32> to vector<2x128xf32>
    %82 = vector.extract_strided_slice %7 {offsets = [64, 0], sizes = [2, 128], strides = [1, 1]} : vector<128x128xf32> to vector<2x128xf32>
    %83 = vector.extract_strided_slice %7 {offsets = [66, 0], sizes = [2, 128], strides = [1, 1]} : vector<128x128xf32> to vector<2x128xf32>
    %84 = vector.extract_strided_slice %7 {offsets = [80, 0], sizes = [2, 128], strides = [1, 1]} : vector<128x128xf32> to vector<2x128xf32>
    %85 = vector.extract_strided_slice %7 {offsets = [82, 0], sizes = [2, 128], strides = [1, 1]} : vector<128x128xf32> to vector<2x128xf32>
    %86 = tpu.concatenate %8, %80, %81, %8, %82, %83, %8, %84, %85 in 1 : vector<2x128xf32>, vector<2x128xf32>, vector<2x128xf32>, vector<2x128xf32>, vector<2x128xf32>, vector<2x128xf32>, vector<2x128xf32>, vector<2x128xf32>, vector<2x128xf32> -> vector<2x1152xf32>
    %c16 = arith.constant 16 : index
    %c0_16 = arith.constant 0 : index
    %87 = vector.load %arg14[%c16, %c0_16] : memref<32x1152xf32, #tpu.memory_space<vmem>>, vector<2x1152xf32>
    tpu.vector_store %arg14[%c16, %c0_16], %86 {strides = array<i32>} : memref<32x1152xf32, #tpu.memory_space<vmem>>, vector<2x1152xf32>,
    %88 = vector.extract_strided_slice %7 {offsets = [50, 0], sizes = [2, 128], strides = [1, 1]} : vector<128x128xf32> to vector<2x128xf32>
    %89 = vector.extract_strided_slice %7 {offsets = [52, 0], sizes = [2, 128], strides = [1, 1]} : vector<128x128xf32> to vector<2x128xf32>
    %90 = vector.extract_strided_slice %7 {offsets = [54, 0], sizes = [2, 128], strides = [1, 1]} : vector<128x128xf32> to vector<2x128xf32>
    %91 = vector.extract_strided_slice %7 {offsets = [66, 0], sizes = [2, 128], strides = [1, 1]} : vector<128x128xf32> to vector<2x128xf32>
    %92 = vector.extract_strided_slice %7 {offsets = [68, 0], sizes = [2, 128], strides = [1, 1]} : vector<128x128xf32> to vector<2x128xf32>
    %93 = vector.extract_strided_slice %7 {offsets = [70, 0], sizes = [2, 128], strides = [1, 1]} : vector<128x128xf32> to vector<2x128xf32>
    %94 = vector.extract_strided_slice %7 {offsets = [82, 0], sizes = [2, 128], strides = [1, 1]} : vector<128x128xf32> to vector<2x128xf32>
    %95 = vector.extract_strided_slice %7 {offsets = [84, 0], sizes = [2, 128], strides = [1, 1]} : vector<128x128xf32> to vector<2x128xf32>
    %96 = vector.extract_strided_slice %7 {offsets = [86, 0], sizes = [2, 128], strides = [1, 1]} : vector<128x128xf32> to vector<2x128xf32>
    %97 = tpu.concatenate %88, %89, %90, %91, %92, %93, %94, %95, %96 in 1 : vector<2x128xf32>, vector<2x128xf32>, vector<2x128xf32>, vector<2x128xf32>, vector<2x128xf32>, vector<2x128xf32>, vector<2x128xf32>, vector<2x128xf32>, vector<2x128xf32> -> vector<2x1152xf32>
    %c18 = arith.constant 18 : index
    %c0_17 = arith.constant 0 : index
    %98 = vector.load %arg14[%c18, %c0_17] : memref<32x1152xf32, #tpu.memory_space<vmem>>, vector<2x1152xf32>
    tpu.vector_store %arg14[%c18, %c0_17], %97 {strides = array<i32>} : memref<32x1152xf32, #tpu.memory_space<vmem>>, vector<2x1152xf32>,
    %99 = vector.extract_strided_slice %7 {offsets = [54, 0], sizes = [2, 128], strides = [1, 1]} : vector<128x128xf32> to vector<2x128xf32>
    %100 = vector.extract_strided_slice %7 {offsets = [56, 0], sizes = [2, 128], strides = [1, 1]} : vector<128x128xf32> to vector<2x128xf32>
    %101 = vector.extract_strided_slice %7 {offsets = [58, 0], sizes = [2, 128], strides = [1, 1]} : vector<128x128xf32> to vector<2x128xf32>
    %102 = vector.extract_strided_slice %7 {offsets = [70, 0], sizes = [2, 128], strides = [1, 1]} : vector<128x128xf32> to vector<2x128xf32>
    %103 = vector.extract_strided_slice %7 {offsets = [72, 0], sizes = [2, 128], strides = [1, 1]} : vector<128x128xf32> to vector<2x128xf32>
    %104 = vector.extract_strided_slice %7 {offsets = [74, 0], sizes = [2, 128], strides = [1, 1]} : vector<128x128xf32> to vector<2x128xf32>
    %105 = vector.extract_strided_slice %7 {offsets = [86, 0], sizes = [2, 128], strides = [1, 1]} : vector<128x128xf32> to vector<2x128xf32>
    %106 = vector.extract_strided_slice %7 {offsets = [88, 0], sizes = [2, 128], strides = [1, 1]} : vector<128x128xf32> to vector<2x128xf32>
    %107 = vector.extract_strided_slice %7 {offsets = [90, 0], sizes = [2, 128], strides = [1, 1]} : vector<128x128xf32> to vector<2x128xf32>
    %108 = tpu.concatenate %99, %100, %101, %102, %103, %104, %105, %106, %107 in 1 : vector<2x128xf32>, vector<2x128xf32>, vector<2x128xf32>, vector<2x128xf32>, vector<2x128xf32>, vector<2x128xf32>, vector<2x128xf32>, vector<2x128xf32>, vector<2x128xf32> -> vector<2x1152xf32>
    %c20 = arith.constant 20 : index
    %c0_18 = arith.constant 0 : index
    %109 = vector.load %arg14[%c20, %c0_18] : memref<32x1152xf32, #tpu.memory_space<vmem>>, vector<2x1152xf32>
    tpu.vector_store %arg14[%c20, %c0_18], %108 {strides = array<i32>} : memref<32x1152xf32, #tpu.memory_space<vmem>>, vector<2x1152xf32>,
    %110 = vector.extract_strided_slice %7 {offsets = [58, 0], sizes = [2, 128], strides = [1, 1]} : vector<128x128xf32> to vector<2x128xf32>
    %111 = vector.extract_strided_slice %7 {offsets = [60, 0], sizes = [2, 128], strides = [1, 1]} : vector<128x128xf32> to vector<2x128xf32>
    %112 = vector.extract_strided_slice %7 {offsets = [62, 0], sizes = [2, 128], strides = [1, 1]} : vector<128x128xf32> to vector<2x128xf32>
    %113 = vector.extract_strided_slice %7 {offsets = [74, 0], sizes = [2, 128], strides = [1, 1]} : vector<128x128xf32> to vector<2x128xf32>
    %114 = vector.extract_strided_slice %7 {offsets = [76, 0], sizes = [2, 128], strides = [1, 1]} : vector<128x128xf32> to vector<2x128xf32>
    %115 = vector.extract_strided_slice %7 {offsets = [78, 0], sizes = [2, 128], strides = [1, 1]} : vector<128x128xf32> to vector<2x128xf32>
    %116 = vector.extract_strided_slice %7 {offsets = [90, 0], sizes = [2, 128], strides = [1, 1]} : vector<128x128xf32> to vector<2x128xf32>
    %117 = vector.extract_strided_slice %7 {offsets = [92, 0], sizes = [2, 128], strides = [1, 1]} : vector<128x128xf32> to vector<2x128xf32>
    %118 = vector.extract_strided_slice %7 {offsets = [94, 0], sizes = [2, 128], strides = [1, 1]} : vector<128x128xf32> to vector<2x128xf32>
    %119 = tpu.concatenate %110, %111, %112, %113, %114, %115, %116, %117, %118 in 1 : vector<2x128xf32>, vector<2x128xf32>, vector<2x128xf32>, vector<2x128xf32>, vector<2x128xf32>, vector<2x128xf32>, vector<2x128xf32>, vector<2x128xf32>, vector<2x128xf32> -> vector<2x1152xf32>
    %c22 = arith.constant 22 : index
    %c0_19 = arith.constant 0 : index
    %120 = vector.load %arg14[%c22, %c0_19] : memref<32x1152xf32, #tpu.memory_space<vmem>>, vector<2x1152xf32>
    tpu.vector_store %arg14[%c22, %c0_19], %119 {strides = array<i32>} : memref<32x1152xf32, #tpu.memory_space<vmem>>, vector<2x1152xf32>,
    %121 = vector.extract_strided_slice %7 {offsets = [80, 0], sizes = [2, 128], strides = [1, 1]} : vector<128x128xf32> to vector<2x128xf32>
    %122 = vector.extract_strided_slice %7 {offsets = [82, 0], sizes = [2, 128], strides = [1, 1]} : vector<128x128xf32> to vector<2x128xf32>
    %123 = vector.extract_strided_slice %7 {offsets = [96, 0], sizes = [2, 128], strides = [1, 1]} : vector<128x128xf32> to vector<2x128xf32>
    %124 = vector.extract_strided_slice %7 {offsets = [98, 0], sizes = [2, 128], strides = [1, 1]} : vector<128x128xf32> to vector<2x128xf32>
    %125 = vector.extract_strided_slice %7 {offsets = [112, 0], sizes = [2, 128], strides = [1, 1]} : vector<128x128xf32> to vector<2x128xf32>
    %126 = vector.extract_strided_slice %7 {offsets = [114, 0], sizes = [2, 128], strides = [1, 1]} : vector<128x128xf32> to vector<2x128xf32>
    %127 = tpu.concatenate %8, %121, %122, %8, %123, %124, %8, %125, %126 in 1 : vector<2x128xf32>, vector<2x128xf32>, vector<2x128xf32>, vector<2x128xf32>, vector<2x128xf32>, vector<2x128xf32>, vector<2x128xf32>, vector<2x128xf32>, vector<2x128xf32> -> vector<2x1152xf32>
    %c24 = arith.constant 24 : index
    %c0_20 = arith.constant 0 : index
    %128 = vector.load %arg14[%c24, %c0_20] : memref<32x1152xf32, #tpu.memory_space<vmem>>, vector<2x1152xf32>
    tpu.vector_store %arg14[%c24, %c0_20], %127 {strides = array<i32>} : memref<32x1152xf32, #tpu.memory_space<vmem>>, vector<2x1152xf32>,
    %129 = vector.extract_strided_slice %7 {offsets = [82, 0], sizes = [2, 128], strides = [1, 1]} : vector<128x128xf32> to vector<2x128xf32>
    %130 = vector.extract_strided_slice %7 {offsets = [84, 0], sizes = [2, 128], strides = [1, 1]} : vector<128x128xf32> to vector<2x128xf32>
    %131 = vector.extract_strided_slice %7 {offsets = [86, 0], sizes = [2, 128], strides = [1, 1]} : vector<128x128xf32> to vector<2x128xf32>
    %132 = vector.extract_strided_slice %7 {offsets = [98, 0], sizes = [2, 128], strides = [1, 1]} : vector<128x128xf32> to vector<2x128xf32>
    %133 = vector.extract_strided_slice %7 {offsets = [100, 0], sizes = [2, 128], strides = [1, 1]} : vector<128x128xf32> to vector<2x128xf32>
    %134 = vector.extract_strided_slice %7 {offsets = [102, 0], sizes = [2, 128], strides = [1, 1]} : vector<128x128xf32> to vector<2x128xf32>
    %135 = vector.extract_strided_slice %7 {offsets = [114, 0], sizes = [2, 128], strides = [1, 1]} : vector<128x128xf32> to vector<2x128xf32>
    %136 = vector.extract_strided_slice %7 {offsets = [116, 0], sizes = [2, 128], strides = [1, 1]} : vector<128x128xf32> to vector<2x128xf32>
    %137 = vector.extract_strided_slice %7 {offsets = [118, 0], sizes = [2, 128], strides = [1, 1]} : vector<128x128xf32> to vector<2x128xf32>
    %138 = tpu.concatenate %129, %130, %131, %132, %133, %134, %135, %136, %137 in 1 : vector<2x128xf32>, vector<2x128xf32>, vector<2x128xf32>, vector<2x128xf32>, vector<2x128xf32>, vector<2x128xf32>, vector<2x128xf32>, vector<2x128xf32>, vector<2x128xf32> -> vector<2x1152xf32>
    %c26 = arith.constant 26 : index
    %c0_21 = arith.constant 0 : index
    %139 = vector.load %arg14[%c26, %c0_21] : memref<32x1152xf32, #tpu.memory_space<vmem>>, vector<2x1152xf32>
    tpu.vector_store %arg14[%c26, %c0_21], %138 {strides = array<i32>} : memref<32x1152xf32, #tpu.memory_space<vmem>>, vector<2x1152xf32>,
    %140 = vector.extract_strided_slice %7 {offsets = [86, 0], sizes = [2, 128], strides = [1, 1]} : vector<128x128xf32> to vector<2x128xf32>
    %141 = vector.extract_strided_slice %7 {offsets = [88, 0], sizes = [2, 128], strides = [1, 1]} : vector<128x128xf32> to vector<2x128xf32>
    %142 = vector.extract_strided_slice %7 {offsets = [90, 0], sizes = [2, 128], strides = [1, 1]} : vector<128x128xf32> to vector<2x128xf32>
    %143 = vector.extract_strided_slice %7 {offsets = [102, 0], sizes = [2, 128], strides = [1, 1]} : vector<128x128xf32> to vector<2x128xf32>
    %144 = vector.extract_strided_slice %7 {offsets = [104, 0], sizes = [2, 128], strides = [1, 1]} : vector<128x128xf32> to vector<2x128xf32>
    %145 = vector.extract_strided_slice %7 {offsets = [106, 0], sizes = [2, 128], strides = [1, 1]} : vector<128x128xf32> to vector<2x128xf32>
    %146 = vector.extract_strided_slice %7 {offsets = [118, 0], sizes = [2, 128], strides = [1, 1]} : vector<128x128xf32> to vector<2x128xf32>
    %147 = vector.extract_strided_slice %7 {offsets = [120, 0], sizes = [2, 128], strides = [1, 1]} : vector<128x128xf32> to vector<2x128xf32>
    %148 = vector.extract_strided_slice %7 {offsets = [122, 0], sizes = [2, 128], strides = [1, 1]} : vector<128x128xf32> to vector<2x128xf32>
    %149 = tpu.concatenate %140, %141, %142, %143, %144, %145, %146, %147, %148 in 1 : vector<2x128xf32>, vector<2x128xf32>, vector<2x128xf32>, vector<2x128xf32>, vector<2x128xf32>, vector<2x128xf32>, vector<2x128xf32>, vector<2x128xf32>, vector<2x128xf32> -> vector<2x1152xf32>
    %c28 = arith.constant 28 : index
    %c0_22 = arith.constant 0 : index
    %150 = vector.load %arg14[%c28, %c0_22] : memref<32x1152xf32, #tpu.memory_space<vmem>>, vector<2x1152xf32>
    tpu.vector_store %arg14[%c28, %c0_22], %149 {strides = array<i32>} : memref<32x1152xf32, #tpu.memory_space<vmem>>, vector<2x1152xf32>,
    %151 = vector.extract_strided_slice %7 {offsets = [90, 0], sizes = [2, 128], strides = [1, 1]} : vector<128x128xf32> to vector<2x128xf32>
    %152 = vector.extract_strided_slice %7 {offsets = [92, 0], sizes = [2, 128], strides = [1, 1]} : vector<128x128xf32> to vector<2x128xf32>
    %153 = vector.extract_strided_slice %7 {offsets = [94, 0], sizes = [2, 128], strides = [1, 1]} : vector<128x128xf32> to vector<2x128xf32>
    %154 = vector.extract_strided_slice %7 {offsets = [106, 0], sizes = [2, 128], strides = [1, 1]} : vector<128x128xf32> to vector<2x128xf32>
    %155 = vector.extract_strided_slice %7 {offsets = [108, 0], sizes = [2, 128], strides = [1, 1]} : vector<128x128xf32> to vector<2x128xf32>
    %156 = vector.extract_strided_slice %7 {offsets = [110, 0], sizes = [2, 128], strides = [1, 1]} : vector<128x128xf32> to vector<2x128xf32>
    %157 = vector.extract_strided_slice %7 {offsets = [122, 0], sizes = [2, 128], strides = [1, 1]} : vector<128x128xf32> to vector<2x128xf32>
    %158 = vector.extract_strided_slice %7 {offsets = [124, 0], sizes = [2, 128], strides = [1, 1]} : vector<128x128xf32> to vector<2x128xf32>
    %159 = vector.extract_strided_slice %7 {offsets = [126, 0], sizes = [2, 128], strides = [1, 1]} : vector<128x128xf32> to vector<2x128xf32>
    %160 = tpu.concatenate %151, %152, %153, %154, %155, %156, %157, %158, %159 in 1 : vector<2x128xf32>, vector<2x128xf32>, vector<2x128xf32>, vector<2x128xf32>, vector<2x128xf32>, vector<2x128xf32>, vector<2x128xf32>, vector<2x128xf32>, vector<2x128xf32> -> vector<2x1152xf32>
    %c30 = arith.constant 30 : index
    %c0_23 = arith.constant 0 : index
    %161 = vector.load %arg14[%c30, %c0_23] : memref<32x1152xf32, #tpu.memory_space<vmem>>, vector<2x1152xf32>
    tpu.vector_store %arg14[%c30, %c0_23], %160 {strides = array<i32>} : memref<32x1152xf32, #tpu.memory_space<vmem>>, vector<2x1152xf32>,
    %c0_24 = arith.constant 0 : index
    %c0_25 = arith.constant 0 : index
    %162 = vector.load %arg14[%c0_24, %c0_25] : memref<32x1152xf32, #tpu.memory_space<vmem>>, vector<32x1152xf32>
    %163 = arith.truncf %162 : vector<32x1152xf32> to vector<32x1152xbf16>
    %c0_26 = arith.constant 0 : index
    %c0_27 = arith.constant 0 : index
    %164 = vector.load %arg3[%c0_26, %c0_27] : memref<1152x128xbf16, #tpu.memory_space<vmem>>, vector<1152x128xbf16>
    %cst_28 = arith.constant dense<0.000000e+00> : vector<32x128xf32>
    %165 = tpu.matmul %163, %164, %cst_28 {dimension_numbers = #tpu.dot_dimension_numbers<[1], [0], [0], [1], [0, 0, 1, 1], [], []>} : vector<32x1152xbf16>, vector<1152x128xbf16>, vector<32x128xf32> -> vector<32x128xf32>
    %c0_29 = arith.constant 0 : index
    %c0_30 = arith.constant 0 : index
    %166 = vector.load %arg4[%c0_29, %c0_30] : memref<1x128xf32, #tpu.memory_space<vmem>>, vector<1x128xf32>
    %167 = vector.broadcast %166 : vector<1x128xf32> to vector<32x128xf32>
    %168 = arith.addf %165, %167 : vector<32x128xf32>
    %cst_31 = arith.constant 0.000000e+00 : f32
    %169 = vector.broadcast %cst_31 : f32 to vector<32x128xf32>
    %170 = arith.maximumf %168, %169 : vector<32x128xf32>
    %171 = vector.extract_strided_slice %170 {offsets = [0, 0], sizes = [2, 128], strides = [1, 1]} : vector<32x128xf32> to vector<2x128xf32>
    %172 = vector.extract_strided_slice %170 {offsets = [2, 0], sizes = [2, 128], strides = [1, 1]} : vector<32x128xf32> to vector<2x128xf32>
    %173 = vector.extract_strided_slice %170 {offsets = [4, 0], sizes = [2, 128], strides = [1, 1]} : vector<32x128xf32> to vector<2x128xf32>
    %174 = vector.extract_strided_slice %170 {offsets = [6, 0], sizes = [2, 128], strides = [1, 1]} : vector<32x128xf32> to vector<2x128xf32>
    %175 = vector.extract_strided_slice %170 {offsets = [8, 0], sizes = [2, 128], strides = [1, 1]} : vector<32x128xf32> to vector<2x128xf32>
    %176 = vector.extract_strided_slice %170 {offsets = [10, 0], sizes = [2, 128], strides = [1, 1]} : vector<32x128xf32> to vector<2x128xf32>
    %177 = vector.extract_strided_slice %170 {offsets = [12, 0], sizes = [2, 128], strides = [1, 1]} : vector<32x128xf32> to vector<2x128xf32>
    %178 = vector.extract_strided_slice %170 {offsets = [14, 0], sizes = [2, 128], strides = [1, 1]} : vector<32x128xf32> to vector<2x128xf32>
    %179 = vector.extract_strided_slice %170 {offsets = [16, 0], sizes = [2, 128], strides = [1, 1]} : vector<32x128xf32> to vector<2x128xf32>
    %180 = vector.extract_strided_slice %170 {offsets = [18, 0], sizes = [2, 128], strides = [1, 1]} : vector<32x128xf32> to vector<2x128xf32>
    %181 = vector.extract_strided_slice %170 {offsets = [20, 0], sizes = [2, 128], strides = [1, 1]} : vector<32x128xf32> to vector<2x128xf32>
    %182 = vector.extract_strided_slice %170 {offsets = [22, 0], sizes = [2, 128], strides = [1, 1]} : vector<32x128xf32> to vector<2x128xf32>
    %183 = vector.extract_strided_slice %170 {offsets = [24, 0], sizes = [2, 128], strides = [1, 1]} : vector<32x128xf32> to vector<2x128xf32>
    %184 = vector.extract_strided_slice %170 {offsets = [26, 0], sizes = [2, 128], strides = [1, 1]} : vector<32x128xf32> to vector<2x128xf32>
    %185 = vector.extract_strided_slice %170 {offsets = [28, 0], sizes = [2, 128], strides = [1, 1]} : vector<32x128xf32> to vector<2x128xf32>
    %186 = vector.extract_strided_slice %170 {offsets = [30, 0], sizes = [2, 128], strides = [1, 1]} : vector<32x128xf32> to vector<2x128xf32>
    %187 = tpu.concatenate %171, %172, %173, %174, %175, %176, %177, %178, %179, %180, %181, %182, %183, %184, %185, %186 in 1 : vector<2x128xf32>, vector<2x128xf32>, vector<2x128xf32>, vector<2x128xf32>, vector<2x128xf32>, vector<2x128xf32>, vector<2x128xf32>, vector<2x128xf32>, vector<2x128xf32>, vector<2x128xf32>, vector<2x128xf32>, vector<2x128xf32>, vector<2x128xf32>, vector<2x128xf32>, vector<2x128xf32>, vector<2x128xf32> -> vector<2x2048xf32>
    %188 = arith.truncf %187 : vector<2x2048xf32> to vector<2x2048xbf16>
    %c0_32 = arith.constant 0 : index
    %c0_33 = arith.constant 0 : index
    %189 = vector.load %arg5[%c0_32, %c0_33] : memref<2048x128xbf16, #tpu.memory_space<vmem>>, vector<2048x128xbf16>
    %cst_34 = arith.constant dense<0.000000e+00> : vector<2x128xf32>
    %190 = tpu.matmul %188, %189, %cst_34 {dimension_numbers = #tpu.dot_dimension_numbers<[1], [0], [0], [1], [0, 0, 1, 1], [], []>} : vector<2x2048xbf16>, vector<2048x128xbf16>, vector<2x128xf32> -> vector<2x128xf32>
    %c0_35 = arith.constant 0 : index
    %c0_36 = arith.constant 0 : index
    %191 = vector.load %arg6[%c0_35, %c0_36] : memref<1x128xf32, #tpu.memory_space<vmem>>, vector<1x128xf32>
    %192 = vector.broadcast %191 : vector<1x128xf32> to vector<2x128xf32>
    %193 = arith.addf %190, %192 : vector<2x128xf32>
    %cst_37 = arith.constant 0.000000e+00 : f32
    %194 = vector.broadcast %cst_37 : f32 to vector<2x128xf32>
    %195 = arith.maximumf %193, %194 : vector<2x128xf32>
    %c0_38 = arith.constant 0 : index
    %c0_39 = arith.constant 0 : index
    %196 = vector.load %arg7[%c0_38, %c0_39] : memref<128x128xbf16, #tpu.memory_space<vmem>>, vector<128x128xbf16>
    %c0_40 = arith.constant 0 : index
    %c0_41 = arith.constant 0 : index
    %197 = vector.load %arg8[%c0_40, %c0_41] : memref<1x128xf32, #tpu.memory_space<vmem>>, vector<1x128xf32>
    %198 = arith.truncf %195 : vector<2x128xf32> to vector<2x128xbf16>
    %cst_42 = arith.constant dense<0.000000e+00> : vector<2x128xf32>
    %199 = tpu.matmul %198, %196, %cst_42 {dimension_numbers = #tpu.dot_dimension_numbers<[1], [0], [0], [1], [0, 0, 1, 1], [], []>} : vector<2x128xbf16>, vector<128x128xbf16>, vector<2x128xf32> -> vector<2x128xf32>
    %200 = vector.broadcast %197 : vector<1x128xf32> to vector<2x128xf32>
    %201 = arith.addf %199, %200 : vector<2x128xf32>
    %cst_43 = arith.constant 0.000000e+00 : f32
    %202 = vector.broadcast %cst_43 : f32 to vector<2x128xf32>
    %203 = arith.maximumf %201, %202 : vector<2x128xf32>
    %c0_44 = arith.constant 0 : index
    %c0_45 = arith.constant 0 : index
    %204 = vector.load %arg9[%c0_44, %c0_45] : memref<128x128xbf16, #tpu.memory_space<vmem>>, vector<128x128xbf16>
    %c0_46 = arith.constant 0 : index
    %c0_47 = arith.constant 0 : index
    %205 = vector.load %arg10[%c0_46, %c0_47] : memref<1x128xf32, #tpu.memory_space<vmem>>, vector<1x128xf32>
    %206 = arith.truncf %203 : vector<2x128xf32> to vector<2x128xbf16>
    %cst_48 = arith.constant dense<0.000000e+00> : vector<2x128xf32>
    %207 = tpu.matmul %206, %204, %cst_48 {dimension_numbers = #tpu.dot_dimension_numbers<[1], [0], [0], [1], [0, 0, 1, 1], [], []>} : vector<2x128xbf16>, vector<128x128xbf16>, vector<2x128xf32> -> vector<2x128xf32>
    %208 = vector.broadcast %205 : vector<1x128xf32> to vector<2x128xf32>
    %209 = arith.addf %207, %208 : vector<2x128xf32>
    %cst_49 = arith.constant 0.000000e+00 : f32
    %210 = vector.broadcast %cst_49 : f32 to vector<2x128xf32>
    %211 = arith.maximumf %209, %210 : vector<2x128xf32>
    %c0_50 = arith.constant 0 : index
    %c0_51 = arith.constant 0 : index
    %212 = vector.load %arg11[%c0_50, %c0_51] : memref<128x128xbf16, #tpu.memory_space<vmem>>, vector<128x128xbf16>
    %c0_52 = arith.constant 0 : index
    %c0_53 = arith.constant 0 : index
    %213 = vector.load %arg12[%c0_52, %c0_53] : memref<1x128xf32, #tpu.memory_space<vmem>>, vector<1x128xf32>
    %214 = arith.truncf %211 : vector<2x128xf32> to vector<2x128xbf16>
    %cst_54 = arith.constant dense<0.000000e+00> : vector<2x128xf32>
    %215 = tpu.matmul %214, %212, %cst_54 {dimension_numbers = #tpu.dot_dimension_numbers<[1], [0], [0], [1], [0, 0, 1, 1], [], []>} : vector<2x128xbf16>, vector<128x128xbf16>, vector<2x128xf32> -> vector<2x128xf32>
    %216 = vector.broadcast %213 : vector<1x128xf32> to vector<2x128xf32>
    %217 = arith.addf %215, %216 : vector<2x128xf32>
    %c0_55 = arith.constant 0 : index
    %c0_56 = arith.constant 0 : index
    %218 = vector.load %arg13[%c0_55, %c0_56] : memref<2x128xf32, #tpu.memory_space<vmem>>, vector<2x128xf32>
    tpu.vector_store %arg13[%c0_55, %c0_56], %217 {strides = array<i32>} : memref<2x128xf32, #tpu.memory_space<vmem>>, vector<2x128xf32>,
    return
  }
}

</mosaic_0001>

<bundles_post_ra>
// kernel: dvn_forward.1
= control target key start
LH: loop header
LB: loop body
LE: loop exit
PB: predicated region body
PF: predicated region fallthrough
CT: control target
= control target key end

     0   :  { %vm150_vm0 = vcmask 1041408   ;;  %vm125_vm1 = vcmask 293888   ;;  %v4058_v21 = vmov 0.0   ;;  %s4952_s1 = inlined_call_operand.vmem [shape: bf16[36,128], index: 1, kind: input, shape index: {}]   ;;  %s4953_s2 = inlined_call_operand.vmem [shape: f32[1,128], index: 2, kind: input, shape index: {}]   ;;  %s4954_s0 = inlined_call_operand.vmem [shape: bf16[128,36], index: 0, kind: input, shape index: {}]   ;;  %s4955_s3 = inlined_call_operand.vmem [shape: bf16[1152,128], index: 3, kind: input, shape index: {}]   ;;  %s4956_s4 = inlined_call_operand.vmem [shape: f32[1,128], index: 4, kind: input, shape index: {}]   ;;  %s4957_s5 = inlined_call_operand.vmem [shape: bf16[2048,128], index: 5, kind: input, shape index: {}]   ;;  %s4958_s6 = inlined_call_operand.vmem [shape: f32[1,128], index: 6, kind: input, shape index: {}]   ;;  %s4959_s8 = inlined_call_operand.vmem [shape: f32[1,128], index: 8, kind: input, shape index: {}]   ;;  %s4960_s7 = inlined_call_operand.vmem [shape: bf16[128,128], index: 7, kind: input, shape index: {}]   ;;  %s4961_s9 = inlined_call_operand.vmem [shape: bf16[128,128], index: 9, kind: input, shape index: {}]   ;;  %s4962_s10 = inlined_call_operand.vmem [shape: f32[1,128], index: 10, kind: input, shape index: {}]   ;;  %s4963_s11 = inlined_call_operand.vmem [shape: bf16[128,128], index: 11, kind: input, shape index: {}]   ;;  %s4964_s12 = inlined_call_operand.vmem [shape: f32[1,128], index: 12, kind: input, shape index: {}]   ;;  %s4965_s13 = inlined_call_operand.vmem [shape: f32[2,128], index: 13, kind: output, shape index: {}]  }
   0x1   :  { %v65_v0 = vld [vmem:[%s4952_s1 + $0x10] sm:$0x3]  ;;  %v3826_v4 = vld [vmem:[%s4952_s1 + $0x8] sm:$0xff]  ;;  %v3825_v5 = vld [vmem:[%s4952_s1] sm:$0xff]  ;;  %225 = vst [vmem:[#allocation2 + $0xb0] sm:$0x3] %v4058_v21 }
   0x2   :  { %v119_v1 = vunpack.c.l.b16 %v65_v0  ;;  %v3817_v6 = vld [vmem:[%s4954_s0] sm:$0xff]  ;;  %v3818_v7 = vld [vmem:[%s4954_s0 + $0x8] sm:$0xff]  ;;  %v3819_v8 = vld [vmem:[%s4954_s0 + $0x10] sm:$0xff]  ;;  %320 = vst [vmem:[#allocation2 + $0x110] sm:$0x3] %v4058_v21  ;;  %v4243_v44 = vrot.slane %v4058_v21, 6 }
   0x3   :  { %v3820_v9 = vld [vmem:[%s4954_s0 + $0x18] sm:$0xff]  ;;  %v3821_v10 = vld [vmem:[%s4954_s0 + $0x20] sm:$0xff]  ;;  %v3822_v11 = vld [vmem:[%s4954_s0 + $0x28] sm:$0xff]  ;;  %226 = vst [vmem:[#allocation2 + $0xd0] sm:$0x3] %v4058_v21  ;;  %v4250_v47 = vrot.slane %v4058_v21, 4 }
   0x4   :  { %v122_v2 = vpack.c.b16 %v119_v1, %v119_v1  ;;  %v3823_v12 = vld [vmem:[%s4954_s0 + $0x30] sm:$0xff]  ;;  %v3834_v13 = vld [vmem:[%s4955_s3 + $0x38] sm:$0xff]  ;;  %v3832_v20 = vld [vmem:[%s4955_s3 + $0x28] sm:$0xff]  ;;  %227 = vst [vmem:[#allocation2 + $0x10] sm:$0x3] %v4058_v21  ;;  %v4260_v51 = vrot.slane %v4058_v21, 2 }
   0x5   :  { %1161 = vmatpush.bf16.msra.mxu1 %v3834_v13  ;;  %v3842_v14 = vld [vmem:[%s4955_s3 + $0x78] sm:$0xff]  ;;  %v3833_v16 = vld [vmem:[%s4955_s3 + $0x30] sm:$0xff]  ;;  %v3840_v22 = vld [vmem:[%s4955_s3 + $0x68] sm:$0xff]  ;;  %228 = vst [vmem:[#allocation2 + $0x48] sm:$0x3] %v4058_v21 }
   0x6   :  { %v152_v3 = vsel %vm150_vm0, %v122_v2, 0  ;;  %v3850_v15 = vld [vmem:[%s4955_s3 + $0xb8] sm:$0xff]  ;;  %1180 = vmatpush.bf16.msra.mxu2 %v3842_v14  ;;  %v3841_v18 = vld [vmem:[%s4955_s3 + $0x70] sm:$0xff]  ;;  %v3848_v23 = vld [vmem:[%s4955_s3 + $0xa8] sm:$0xff]  ;;  %231 = vst [vmem:[#allocation2 + $0x30] sm:$0x3] %v4058_v21 }
   0x7   :  { %159 = vmatpush.bf16.msra.mxu0 %v152_v3  ;;  %1199 = vmatpush.bf16.msra.mxu3 %v3850_v15  ;;  %v3824_v17 = vld [vmem:[%s4954_s0 + $0x38] sm:$0xff]  ;;  %v3849_v19 = vld [vmem:[%s4955_s3 + $0xb0] sm:$0xff]  ;;  %v4203_v24 = vld [vmem:[%s4953_s2] ss:$0 sm:$0xff]  ;;  %323 = vst [vmem:[#allocation2 + $0xf8] sm:$0x3] %v4058_v21 }
   0x8   :  { %v3831_v25 = vld [vmem:[%s4955_s3 + $0x20] sm:$0xff]  ;;  %v3830_v30 = vld [vmem:[%s4955_s3 + $0x18] sm:$0xff]  ;;  %326 = vst [vmem:[#allocation2 + $0x78] sm:$0x3] %v4058_v21  ;;  %v3829_v37 = vld [vmem:[%s4955_s3 + $0x10] sm:$0xff] }
   0x9   :  { %1162 = vmatpush.bf16.msra.mxu1 %v3833_v16  ;;  %v3839_v26 = vld [vmem:[%s4955_s3 + $0x60] sm:$0xff]  ;;  %393 = vst [vmem:[#allocation2 + $0x90] sm:$0x3] %v4058_v21  ;;  %v3838_v32 = vld [vmem:[%s4955_s3 + $0x58] sm:$0xff]  ;;  %v3837_v41 = vld [vmem:[%s4955_s3 + $0x50] sm:$0xff] }
   0xa   :  { %1181 = vmatpush.bf16.msra.mxu2 %v3841_v18  ;;  %v3847_v27 = vld [vmem:[%s4955_s3 + $0xa0] sm:$0xff]  ;;  %v3846_v33 = vld [vmem:[%s4955_s3 + $0x98] sm:$0xff]  ;;  %396 = vst [vmem:[#allocation2 + $0x58] sm:$0x3] %v4058_v21  ;;  %v3845_v43 = vld [vmem:[%s4955_s3 + $0x90] sm:$0xff] }
   0xb   :  { %160 = vmatpush.bf16.msra.mxu0 %v3826_v4  ;;  %1200 = vmatpush.bf16.msra.mxu3 %v3849_v19  ;;  %399 = vst [vmem:[#allocation2 + $0xa8] sm:$0x3] %v4058_v21  ;;  %v3828_v46 = vld [vmem:[%s4955_s3 + $0x8] sm:$0xff]  ;;  %v3827_v54 = vld [vmem:[%s4955_s3] sm:$0xff] }
   0xc   :  { %463 = vst [vmem:[#allocation2 + $0xc0] sm:$0x3] %v4058_v21  ;;  %v3836_v49 = vld [vmem:[%s4955_s3 + $0x48] sm:$0xff]  ;;  %v3835_v58 = vld [vmem:[%s4955_s3 + $0x40] sm:$0xff] }
   0xd   :  { %1163 = vmatpush.bf16.msra.mxu1 %v3832_v20  ;;  %v3844_v50 = vld [vmem:[%s4955_s3 + $0x88] sm:$0xff]  ;;  %253 = vst [vmem:[#allocation2 + $0xb0] sm:$0xc] %v4243_v44  ;;  %v3843_v60 = vld [vmem:[%s4955_s3 + $0x80] sm:$0xff] }
   0xe   :  { %1182 = vmatpush.bf16.msra.mxu2 %v3840_v22  ;;  %280 = vst [vmem:[#allocation2 + $0xb0] sm:$0x30] %v4250_v47 }
   0xf   :  { %161 = vmatpush.bf16.msra.mxu0 %v3825_v5  ;;  %1201 = vmatpush.bf16.msra.mxu3 %v3848_v23  ;;  %305 = vst [vmem:[#allocation2 + $0xb0] sm:$0xc0] %v4260_v51 }
  0x10   :  { %254 = vst [vmem:[#allocation2 + $0xd0] sm:$0xc] %v4243_v44 }
  0x11   :  { %1164 = vmatpush.bf16.msra.mxu1 %v3831_v25  ;;  %255 = vst [vmem:[#allocation2 + $0x10] sm:$0xc] %v4243_v44 }
  0x12   :  { %2910 = vmatmul.msk.bf16.vlgmr.msra.gmra.mxu0 %vm125_vm1, %v3817_v6  ;;  %1183 = vmatpush.bf16.msra.mxu2 %v3839_v26  ;;  %281 = vst [vmem:[#allocation2 + $0xd0] sm:$0x30] %v4250_v47 }
  0x13   :  { %1202 = vmatpush.bf16.msra.mxu3 %v3847_v27  ;;  %282 = vst [vmem:[#allocation2 + $0x10] sm:$0x30] %v4250_v47 }
  0x14   :  { %306 = vst [vmem:[#allocation2 + $0xd0] sm:$0xc0] %v4260_v51 }
  0x15   :  { %1165 = vmatpush.bf16.msra.mxu1 %v3830_v30  ;;  %307 = vst [vmem:[#allocation2 + $0x10] sm:$0xc0] %v4260_v51 }
  0x16   :  { %1184 = vmatpush.bf16.msra.mxu2 %v3838_v32  ;;  %v527_v27 = vld [vmem:[#allocation2 + $0xb0] sm:$0xff]  ;;  %466 = vst [vmem:[#allocation2 + $0xb8] sm:$0x3] %v4058_v21 }
  0x17   :  { %1203 = vmatpush.bf16.msra.mxu3 %v3846_v33  ;;  %469 = vst [vmem:[#allocation2] sm:$0x3] %v4058_v21 }
  0x19   :  { %1166 = vmatpush.bf16.msra.mxu1 %v3829_v37 }
  0x1a   :  { %1185 = vmatpush.bf16.msra.mxu2 %v3837_v41 }
  0x1b   :  { %1204 = vmatpush.bf16.msra.mxu3 %v3845_v43  ;;  %v528_v44 = vld [vmem:[#allocation2 + $0xd0] sm:$0xff] }
  0x1c   :  { %v529_v47 = vld [vmem:[#allocation2 + $0x10] sm:$0xff] }
  0x1d   :  { %1167 = vmatpush.bf16.msra.mxu1 %v3828_v46 }
  0x1e   :  { %1186 = vmatpush.bf16.msra.mxu2 %v3836_v49 }
  0x1f   :  { %1205 = vmatpush.bf16.msra.mxu3 %v3844_v50 }
  0x21   :  { %1168 = vmatpush.bf16.msra.mxu1 %v3827_v54 }
  0x22   :  { %2911 = vmatmul.msk.bf16.gmra.mxu0 %vm125_vm1, %v3818_v7  ;;  %1187 = vmatpush.bf16.msra.mxu2 %v3835_v58 }
  0x23   :  { %1206 = vmatpush.bf16.msra.mxu3 %v3843_v60 }
  0x32   :  { %2912 = vmatmul.msk.bf16.gmra.mxu0 %vm125_vm1, %v3819_v8 }
  0x42   :  { %2913 = vmatmul.msk.bf16.gmra.mxu0 %vm125_vm1, %v3820_v9 }
  0x52   :  { %2914 = vmatmul.msk.bf16.gmra.mxu0 %vm125_vm1, %v3821_v10 }
  0x62   :  { %2915 = vmatmul.msk.bf16.gmra.mxu0 %vm125_vm1, %v3822_v11 }
  0x72   :  { %2916 = vmatmul.msk.bf16.gmra.mxu0 %vm125_vm1, %v3823_v12 }
  0x82   :  { %2917 = vmatmul.msk.bf16.gmra.mxu0 %vm125_vm1, %v3824_v17 }
  0x8f   :  { %v163_v28 = vpop.f32.mrf.mxu0 }
  0x90   :  { %v164_v29 = vadd.f32 %v4203_v24, %v163_v28 }
  0x92   :  { %v203_v31 = vmax.f32 %v164_v29, 0.0 }
  0x94   :  { %v220_v34 = vrot.slane %v203_v31, 2  ;;  %229 = vst [vmem:[#allocation2 + $0x108] sm:$0x3] %v203_v31  ;;  %v235_v35 = vrot.slane %v203_v31, 6  ;;  %v2918_v36 = vrot.slane %v203_v31, 10 }
  0x96   :  { %230 = vst [vmem:[#allocation2 + $0x68] sm:$0x3] %v220_v34  ;;  %v240_v38 = vrot.slane %v220_v34, 6  ;;  %v242_v39 = vrot.slane %v235_v35, 6  ;;  %v267_v40 = vrot.slane %v235_v35, 4 }
  0x97   :  { %257 = vst [vmem:[#allocation2 + $0x108] sm:$0xc] %v2918_v36  ;;  %v165_v42 = vpop.f32.mrf.mxu0 }
  0x98   :  { %256 = vst [vmem:[#allocation2 + $0x48] sm:$0xc] %v240_v38  ;;  %v166_v45 = vadd.f32 %v4203_v24, %v165_v42 }
  0x99   :  { %258 = vst [vmem:[#allocation2 + $0x68] sm:$0xc] %v242_v39 }
  0x9a   :  { %283 = vst [vmem:[#allocation2 + $0x48] sm:$0x30] %v267_v40  ;;  %v204_v48 = vmax.f32 %v166_v45, 0.0 }
  0x9c   :  { %v263_v52 = vrot.slane %v204_v48, 2  ;;  %v268_v53 = vrot.slane %v204_v48, 4  ;;  %310 = vst [vmem:[#allocation2 + $0x68] sm:$0xc0] %v204_v48 }
  0x9e   :  { %v269_v55 = vrot.slane %v263_v52, 4  ;;  %284 = vst [vmem:[#allocation2 + $0x108] sm:$0x30] %v268_v53  ;;  %v292_v56 = vrot.slane %v263_v52, 2  ;;  %v293_v57 = vrot.slane %v268_v53, 2 }
  0x9f   :  { %v168_v59 = vpop.f32.mrf.mxu0 }
  0xa0   :  { %285 = vst [vmem:[#allocation2 + $0x68] sm:$0x30] %v269_v55  ;;  %v169_v61 = vadd.f32 %v4203_v24, %v168_v59 }
  0xa1   :  { %308 = vst [vmem:[#allocation2 + $0x48] sm:$0xc0] %v292_v56 }
  0xa2   :  { %309 = vst [vmem:[#allocation2 + $0x108] sm:$0xc0] %v293_v57  ;;  %v205_v62 = vmax.f32 %v169_v61, 0.0 }
  0xa4   :  { %v223_v63 = vrot.slane %v205_v62, 2  ;;  %232 = vst [vmem:[#allocation2 + $0x18] sm:$0x3] %v205_v62  ;;  %v236_v0 = vrot.slane %v205_v62, 4  ;;  %v237_v1 = vrot.slane %v205_v62, 6 }
  0xa5   :  { %321 = vst [vmem:[#allocation2 + $0x118] sm:$0x3] %v205_v62 }
  0xa6   :  { %233 = vst [vmem:[#allocation2 + $0x80] sm:$0x3] %v223_v63  ;;  %v243_v2 = vrot.slane %v223_v63, 6  ;;  %v244_v3 = vrot.slane %v236_v0, 6  ;;  %v245_v4 = vrot.slane %v237_v1, 6  ;;  %v270_v5 = vrot.slane %v237_v1, 4 }
  0xa7   :  { %322 = vst [vmem:[#allocation2 + $0x98] sm:$0x3] %v223_v63  ;;  %v170_v6 = vpop.f32.mrf.mxu0  ;;  %v3866_v1 = vld [vmem:[%s4955_s3 + $0x138] sm:$0xff] }
  0xa8   :  { %259 = vst [vmem:[#allocation2 + $0x30] sm:$0xc] %v243_v2  ;;  %v171_v7 = vadd.f32 %v4203_v24, %v170_v6  ;;  %v3874_v2 = vld [vmem:[%s4955_s3 + $0x178] sm:$0xff]  ;;  %1237 = vmatpush.bf16.msrb.mxu2 %v3866_v1 }
  0xa9   :  { %260 = vst [vmem:[#allocation2 + $0x18] sm:$0xc] %v244_v3  ;;  %v3857_v3 = vld [vmem:[%s4955_s3 + $0xf0] sm:$0xff]  ;;  %1256 = vmatpush.bf16.msrb.mxu3 %v3874_v2 }
  0xaa   :  { %261 = vst [vmem:[#allocation2 + $0x80] sm:$0xc] %v245_v4  ;;  %v206_v8 = vmax.f32 %v171_v7, 0.0  ;;  %v3865_v7 = vld [vmem:[%s4955_s3 + $0x130] sm:$0xff] }
  0xab   :  { %286 = vst [vmem:[#allocation2 + $0x30] sm:$0x30] %v270_v5 }
  0xac   :  { %334 = vst [vmem:[#allocation2 + $0x110] sm:$0xc] %v205_v62  ;;  %v265_v9 = vrot.slane %v206_v8, 2  ;;  %v271_v10 = vrot.slane %v206_v8, 4  ;;  %v3858_v62 = vld [vmem:[%s4955_s3 + $0xf8] sm:$0xff]  ;;  %1238 = vmatpush.bf16.msrb.mxu2 %v3865_v7 }
  0xad   :  { %335 = vst [vmem:[#allocation2 + $0x118] sm:$0xc] %v223_v63  ;;  %1218 = vmatpush.bf16.msrb.mxu1 %v3858_v62  ;;  %v3888_v62 = vld [vmem:[%s4955_s3 + $0x1e8] sm:$0xff] }
  0xae   :  { %336 = vst [vmem:[#allocation2 + $0x98] sm:$0xc] %v236_v0  ;;  %v272_v11 = vrot.slane %v265_v9, 4  ;;  %v295_v12 = vrot.slane %v265_v9, 2  ;;  %v296_v13 = vrot.slane %v271_v10, 2  ;;  %v366_v17 = vrot.slane %v271_v10, 4 }
  0xaf   :  { %357 = vst [vmem:[#allocation2 + $0x110] sm:$0x30] %v223_v63  ;;  %v173_v14 = vpop.f32.mrf.mxu0 }
  0xb0   :  { %287 = vst [vmem:[#allocation2 + $0x18] sm:$0x30] %v271_v10  ;;  %v174_v15 = vadd.f32 %v4203_v24, %v173_v14  ;;  %v3864_v14 = vld [vmem:[%s4955_s3 + $0x128] sm:$0xff] }
  0xb1   :  { %288 = vst [vmem:[#allocation2 + $0x80] sm:$0x30] %v272_v11  ;;  %1219 = vmatpush.bf16.msrb.mxu1 %v3857_v3  ;;  %1239 = vmatpush.bf16.msrb.mxu2 %v3864_v14 }
  0xb2   :  { %311 = vst [vmem:[#allocation2 + $0x30] sm:$0xc0] %v295_v12  ;;  %v207_v16 = vmax.f32 %v174_v15, 0.0  ;;  %v3872_v15 = vld [vmem:[%s4955_s3 + $0x168] sm:$0xff] }
  0xb3   :  { %312 = vst [vmem:[#allocation2 + $0x18] sm:$0xc0] %v296_v13 }
  0xb4   :  { %313 = vst [vmem:[#allocation2 + $0x80] sm:$0xc0] %v206_v8  ;;  %v315_v18 = vrot.slane %v207_v16, 2  ;;  %v330_v22 = vrot.slane %v207_v16, 4  ;;  %v3873_v8 = vld [vmem:[%s4955_s3 + $0x170] sm:$0xff] }
  0xb5   :  { %358 = vst [vmem:[#allocation2 + $0x118] sm:$0x30] %v295_v12  ;;  %1257 = vmatpush.bf16.msrb.mxu3 %v3873_v8 }
  0xb6   :  { %359 = vst [vmem:[#allocation2 + $0x98] sm:$0x30] %v296_v13  ;;  %v3856_v13 = vld [vmem:[%s4955_s3 + $0xe8] sm:$0xff] }
  0xb7   :  { %378 = vst [vmem:[#allocation2 + $0x110] sm:$0xc0] %v271_v10  ;;  %v175_v19 = vpop.f32.mrf.mxu0  ;;  %1220 = vmatpush.bf16.msrb.mxu1 %v3856_v13 }
  0xb8   :  { %379 = vst [vmem:[#allocation2 + $0x118] sm:$0xc0] %v272_v11  ;;  %v176_v20 = vadd.f32 %v4203_v24, %v175_v19 }
  0xb9   :  { %380 = vst [vmem:[#allocation2 + $0x98] sm:$0xc0] %v366_v17  ;;  %v3855_v17 = vld [vmem:[%s4955_s3 + $0xe0] sm:$0xff]  ;;  %1258 = vmatpush.bf16.msrb.mxu3 %v3872_v15 }
  0xba   :  { %324 = vst [vmem:[#allocation2 + $0x38] sm:$0x3] %v207_v16  ;;  %v208_v23 = vmax.f32 %v176_v20, 0.0  ;;  %v3863_v20 = vld [vmem:[%s4955_s3 + $0x120] sm:$0xff] }
  0xbb   :  { %325 = vst [vmem:[#allocation2 + $0x8] sm:$0x3] %v315_v18  ;;  %1221 = vmatpush.bf16.msrb.mxu1 %v3855_v17  ;;  %1240 = vmatpush.bf16.msrb.mxu2 %v3863_v20  ;;  %v3887_v15 = vld [vmem:[%s4955_s3 + $0x1e0] sm:$0xff] }
  0xbc   :  { %337 = vst [vmem:[#allocation2 + $0xf8] sm:$0xc] %v207_v16  ;;  %v344_v25 = vrot.slane %v208_v23, 2  ;;  %v345_v26 = vrot.slane %v208_v23, 4  ;;  %v3854_v23 = vld [vmem:[%s4955_s3 + $0xd8] sm:$0xff] }
  0xbd   :  { %338 = vst [vmem:[#allocation2 + $0x38] sm:$0xc] %v315_v18 }
  0xbe   :  { %339 = vst [vmem:[#allocation2 + $0x8] sm:$0xc] %v330_v22  ;;  %v349_v28 = vrot.slane %v344_v25, 2  ;;  %v350_v29 = vrot.slane %v345_v26, 2  ;;  %v367_v30 = vrot.slane %v344_v25, 4  ;;  %v536_v31 = vld [vmem:[#allocation2 + $0x110] sm:$0xff] }
  0xbf   :  { %360 = vst [vmem:[#allocation2 + $0xf8] sm:$0x30] %v315_v18  ;;  %v178_v32 = vpop.f32.mrf.mxu0  ;;  %v368_v33 = vrot.slane %v345_v26, 4  ;;  %v563_v34 = vpack.c.bf16 %v536_v31, %v527_v27  ;;  %v537_v42 = vld [vmem:[#allocation2 + $0x118] sm:$0xff]  ;;  %v3871_v22 = vld [vmem:[%s4955_s3 + $0x160] sm:$0xff]  ;;  %1222 = vmatpush.bf16.msrb.mxu1 %v3854_v23  ;;  %v3853_v31 = vld [vmem:[%s4955_s3 + $0xd0] sm:$0xff] }
  0xc0   :  { %361 = vst [vmem:[#allocation2 + $0x38] sm:$0x30] %v349_v28  ;;  %v179_v35 = vadd.f32 %v4203_v24, %v178_v32  ;;  %v538_v43 = vld [vmem:[#allocation2 + $0x98] sm:$0xff]  ;;  %v564_v46 = vpack.c.bf16 %v537_v42, %v528_v44  ;;  %1259 = vmatpush.bf16.msrb.mxu3 %v3871_v22  ;;  %v3861_v32 = vld [vmem:[%s4955_s3 + $0x110] sm:$0xff]  ;;  %v3851_v44 = vld [vmem:[%s4955_s3 + $0xc0] sm:$0xff] }
  0xc1   :  { %362 = vst [vmem:[#allocation2 + $0x8] sm:$0x30] %v350_v29  ;;  %1169 = vmatmul.bf16.vlgmr.msra.gmra.mxu1 %v563_v34  ;;  %v565_v49 = vpack.c.bf16 %v538_v43, %v529_v47  ;;  %v3862_v27 = vld [vmem:[%s4955_s3 + $0x118] sm:$0xff]  ;;  %v3867_v47 = vld [vmem:[%s4955_s3 + $0x140] sm:$0xff] }
  0xc2   :  { %381 = vst [vmem:[#allocation2 + $0xf8] sm:$0xc0] %v345_v26  ;;  %v209_v36 = vmax.f32 %v179_v35, 0.0  ;;  %1188 = vmatmul.bf16.vlgmr.msra.gmra.mxu2 %v564_v46  ;;  %v3870_v28 = vld [vmem:[%s4955_s3 + $0x158] sm:$0xff]  ;;  %v3859_v46 = vld [vmem:[%s4955_s3 + $0x100] sm:$0xff] }
  0xc3   :  { %382 = vst [vmem:[#allocation2 + $0x38] sm:$0xc0] %v367_v30  ;;  %1207 = vmatmul.bf16.vlgmr.msra.gmra.mxu3 %v565_v49  ;;  %1241 = vmatpush.bf16.msrb.mxu2 %v3862_v27  ;;  %v3890_v49 = vld [vmem:[%s4955_s3 + $0x1f8] sm:$0xff]  ;;  %v3877_v27 = vld [vmem:[%s4955_s3 + $0x190] sm:$0xff] }
  0xc4   :  { %383 = vst [vmem:[#allocation2 + $0x8] sm:$0xc0] %v368_v33  ;;  %v318_v39 = vrot.slane %v209_v36, 2  ;;  %v332_v40 = vrot.slane %v209_v36, 4  ;;  %1260 = vmatpush.bf16.msrb.mxu3 %v3870_v28  ;;  %v3869_v33 = vld [vmem:[%s4955_s3 + $0x150] sm:$0xff]  ;;  %1223 = vmatpush.bf16.msrb.mxu1 %v3853_v31  ;;  %v3886_v23 = vld [vmem:[%s4955_s3 + $0x1d8] sm:$0xff] }
  0xc5   :  { %327 = vst [vmem:[#allocation2 + $0x20] sm:$0x3] %v209_v36  ;;  %v3893_v31 = vld [vmem:[%s4955_s3 + $0x210] sm:$0xff] }
  0xc6   :  { %328 = vst [vmem:[#allocation2 + $0xc8] sm:$0x3] %v318_v39 }
  0xc7   :  { %v180_v37 = vpop.f32.mrf.mxu0  ;;  %340 = vst [vmem:[#allocation2 + $0x78] sm:$0xc] %v209_v36  ;;  %1242 = vmatpush.bf16.msrb.mxu2 %v3861_v32 }
  0xc8   :  { %v181_v38 = vadd.f32 %v4203_v24, %v180_v37  ;;  %341 = vst [vmem:[#allocation2 + $0x20] sm:$0xc] %v318_v39  ;;  %1261 = vmatpush.bf16.msrb.mxu3 %v3869_v33  ;;  %v3876_v33 = vld [vmem:[%s4955_s3 + $0x188] sm:$0xff] }
  0xc9   :  { %342 = vst [vmem:[#allocation2 + $0xc8] sm:$0xc] %v332_v40 }
  0xca   :  { %v210_v41 = vmax.f32 %v181_v38, 0.0  ;;  %363 = vst [vmem:[#allocation2 + $0x78] sm:$0x30] %v318_v39 }
  0xcb   :  { %394 = vst [vmem:[#allocation2 + $0xa0] sm:$0x3] %v209_v36 }
  0xcc   :  { %v347_v48 = vrot.slane %v210_v41, 2  ;;  %v348_v50 = vrot.slane %v210_v41, 4  ;;  %406 = vst [vmem:[#allocation2 + $0x90] sm:$0xc] %v209_v36  ;;  %v3852_v36 = vld [vmem:[%s4955_s3 + $0xc8] sm:$0xff] }
  0xcd   :  { %408 = vst [vmem:[#allocation2 + $0x70] sm:$0xc] %v332_v40  ;;  %v3868_v40 = vld [vmem:[%s4955_s3 + $0x148] sm:$0xff]  ;;  %1224 = vmatpush.bf16.msrb.mxu1 %v3852_v36 }
  0xce   :  { %v351_v21 = vrot.slane %v347_v48, 2  ;;  %395 = vst [vmem:[#allocation2 + $0x70] sm:$0x3] %v318_v39  ;;  %v352_v51 = vrot.slane %v348_v50, 2  ;;  %v369_v52 = vrot.slane %v347_v48, 4  ;;  %v370_v55 = vrot.slane %v348_v50, 4  ;;  %1262 = vmatpush.bf16.msrb.mxu3 %v3868_v40 }
  0xcf   :  { %v183_v45 = vpop.f32.mrf.mxu0  ;;  %407 = vst [vmem:[#allocation2 + $0xa0] sm:$0xc] %v318_v39  ;;  %v3884_v36 = vld [vmem:[%s4955_s3 + $0x1c8] sm:$0xff] }
  0xd0   :  { %429 = vst [vmem:[#allocation2 + $0x90] sm:$0x30] %v318_v39  ;;  %v184_v53 = vadd.f32 %v4203_v24, %v183_v45  ;;  %v3860_v39 = vld [vmem:[%s4955_s3 + $0x108] sm:$0xff]  ;;  %v3882_v45 = vld [vmem:[%s4955_s3 + $0x1b8] sm:$0xff] }
  0xd1   :  { %364 = vst [vmem:[#allocation2 + $0x20] sm:$0x30] %v351_v21  ;;  %1243 = vmatpush.bf16.msrb.mxu2 %v3860_v39  ;;  %1225 = vmatpush.bf16.msrb.mxu1 %v3851_v44  ;;  %v530_v39 = vld [vmem:[#allocation2 + $0x48] sm:$0xff] }
  0xd2   :  { %365 = vst [vmem:[#allocation2 + $0xc8] sm:$0x30] %v352_v51  ;;  %v211_v57 = vmax.f32 %v184_v53, 0.0  ;;  %1263 = vmatpush.bf16.msrb.mxu3 %v3867_v47  ;;  %v541_v40 = vld [vmem:[#allocation2 + $0x8] sm:$0xff]  ;;  %v3891_v47 = vld [vmem:[%s4955_s3 + $0x200] sm:$0xff] }
  0xd3   :  { %384 = vst [vmem:[#allocation2 + $0x78] sm:$0xc0] %v348_v50 }
  0xd4   :  { %385 = vst [vmem:[#allocation2 + $0x20] sm:$0xc0] %v369_v52  ;;  %v388_v59 = vrot.slane %v211_v57, 2  ;;  %v402_v0 = vrot.slane %v211_v57, 4 }
  0xd5   :  { %386 = vst [vmem:[#allocation2 + $0xc8] sm:$0xc0] %v370_v55  ;;  %1275 = vmatpush.bf16.msra.mxu1 %v3882_v45  ;;  %1244 = vmatpush.bf16.msrb.mxu2 %v3859_v46  ;;  %v532_v45 = vld [vmem:[#allocation2 + $0x68] sm:$0xff]  ;;  %v3883_v46 = vld [vmem:[%s4955_s3 + $0x1c0] sm:$0xff] }
  0xd6   :  { %430 = vst [vmem:[#allocation2 + $0xa0] sm:$0x30] %v351_v21 }
  0xd7   :  { %v185_v54 = vpop.f32.mrf.mxu0  ;;  %431 = vst [vmem:[#allocation2 + $0x70] sm:$0x30] %v352_v51 }
  0xd8   :  { %v186_v56 = vadd.f32 %v4203_v24, %v185_v54  ;;  %448 = vst [vmem:[#allocation2 + $0x90] sm:$0xc0] %v348_v50  ;;  %v3898_v50 = vld [vmem:[%s4955_s3 + $0x238] sm:$0xff]  ;;  %v3889_v54 = vld [vmem:[%s4955_s3 + $0x1f0] sm:$0xff] }
  0xd9   :  { %449 = vst [vmem:[#allocation2 + $0xa0] sm:$0xc0] %v369_v52  ;;  %v3881_v52 = vld [vmem:[%s4955_s3 + $0x1b0] sm:$0xff]  ;;  %1294 = vmatpush.bf16.msra.mxu2 %v3890_v49  ;;  %1313 = vmatpush.bf16.msra.mxu3 %v3898_v50 }
  0xda   :  { %v212_v58 = vmax.f32 %v186_v56, 0.0  ;;  %450 = vst [vmem:[#allocation2 + $0x70] sm:$0xc0] %v370_v55  ;;  %v3897_v55 = vld [vmem:[%s4955_s3 + $0x230] sm:$0xff]  ;;  %1276 = vmatpush.bf16.msra.mxu1 %v3881_v52 }
  0xdb   :  { %397 = vst [vmem:[#allocation2 + $0xe0] sm:$0x3] %v211_v57 }
  0xdc   :  { %v416_v61 = vrot.slane %v212_v58, 2  ;;  %v417_v63 = vrot.slane %v212_v58, 4  ;;  %398 = vst [vmem:[#allocation2 + $0x60] sm:$0x3] %v388_v59 }
  0xdd   :  { %409 = vst [vmem:[#allocation2 + $0x58] sm:$0xc] %v211_v57  ;;  %1295 = vmatpush.bf16.msra.mxu2 %v3889_v54  ;;  %1314 = vmatpush.bf16.msra.mxu3 %v3897_v55 }
  0xde   :  { %v421_v5 = vrot.slane %v416_v61, 2  ;;  %410 = vst [vmem:[#allocation2 + $0xe0] sm:$0xc] %v388_v59  ;;  %v422_v6 = vrot.slane %v417_v63, 2  ;;  %v438_v9 = vrot.slane %v416_v61, 4  ;;  %v439_v12 = vrot.slane %v417_v63, 4 }
  0xdf   :  { %v188_v60 = vpop.f32.mrf.mxu0  ;;  %411 = vst [vmem:[#allocation2 + $0x60] sm:$0xc] %v402_v0  ;;  %v545_v1 = vld [vmem:[#allocation2 + $0x90] sm:$0xff] }
  0xe0   :  { %v189_v4 = vadd.f32 %v4203_v24, %v188_v60  ;;  %432 = vst [vmem:[#allocation2 + $0x58] sm:$0x30] %v388_v59  ;;  %v3880_v59 = vld [vmem:[%s4955_s3 + $0x1a8] sm:$0xff]  ;;  %v546_v3 = vld [vmem:[#allocation2 + $0xa0] sm:$0xff] }
  0xe1   :  { %433 = vst [vmem:[#allocation2 + $0xe0] sm:$0x30] %v421_v5  ;;  %1277 = vmatpush.bf16.msra.mxu1 %v3880_v59  ;;  %v3879_v5 = vld [vmem:[%s4955_s3 + $0x1a0] sm:$0xff]  ;;  %1296 = vmatpush.bf16.msra.mxu2 %v3888_v62  ;;  %v533_v59 = vld [vmem:[#allocation2 + $0x30] sm:$0xff]  ;;  %v534_v62 = vld [vmem:[#allocation2 + $0x18] sm:$0xff] }
  0xe2   :  { %v213_v10 = vmax.f32 %v189_v4, 0.0  ;;  %434 = vst [vmem:[#allocation2 + $0x60] sm:$0x30] %v422_v6 }
  0xe3   :  { %451 = vst [vmem:[#allocation2 + $0x58] sm:$0xc0] %v417_v63  ;;  %v3896_v63 = vld [vmem:[%s4955_s3 + $0x228] sm:$0xff] }
  0xe4   :  { %452 = vst [vmem:[#allocation2 + $0xe0] sm:$0xc0] %v438_v9  ;;  %v404_v18 = vrot.slane %v213_v10, 4  ;;  %v391_v25 = vrot.slane %v213_v10, 2  ;;  %1315 = vmatpush.bf16.msra.mxu3 %v3896_v63 }
  0xe5   :  { %453 = vst [vmem:[#allocation2 + $0x60] sm:$0xc0] %v439_v12  ;;  %1278 = vmatpush.bf16.msra.mxu1 %v3879_v5  ;;  %1297 = vmatpush.bf16.msra.mxu2 %v3887_v15  ;;  %v3914_v15 = vld [vmem:[%s4957_s5 + $0x78] sm:$0xff] }
  0xe6   :  { %400 = vst [vmem:[#allocation2 + $0x88] sm:$0x3] %v213_v10 }
  0xe7   :  { %v190_v11 = vpop.f32.mrf.mxu0  ;;  %412 = vst [vmem:[#allocation2 + $0xa8] sm:$0xc] %v213_v10 }
  0xe8   :  { %v191_v16 = vadd.f32 %v4203_v24, %v190_v11  ;;  %414 = vst [vmem:[#allocation2 + $0xd8] sm:$0xc] %v404_v18 }
  0xe9   :  { %464 = vst [vmem:[#allocation2 + $0x50] sm:$0x3] %v213_v10  ;;  %1298 = vmatpush.bf16.msra.mxu2 %v3886_v23  ;;  %v3912_v23 = vld [vmem:[%s4957_s5 + $0x68] sm:$0xff] }
  0xea   :  { %v214_v19 = vmax.f32 %v191_v16, 0.0  ;;  %476 = vst [vmem:[#allocation2 + $0xc0] sm:$0xc] %v213_v10  ;;  %v547_v10 = vld [vmem:[#allocation2 + $0x70] sm:$0xff]  ;;  %v3895_v16 = vld [vmem:[%s4955_s3 + $0x220] sm:$0xff] }
  0xeb   :  { %478 = vst [vmem:[#allocation2 + $0xf0] sm:$0xc] %v404_v18  ;;  %1316 = vmatpush.bf16.msra.mxu3 %v3895_v16  ;;  %v3922_v16 = vld [vmem:[%s4957_s5 + $0xb8] sm:$0xff] }
  0xec   :  { %v419_v29 = vrot.slane %v214_v19, 2  ;;  %v420_v30 = vrot.slane %v214_v19, 4  ;;  %401 = vst [vmem:[#allocation2 + $0xd8] sm:$0x3] %v391_v25  ;;  %v550_v55 = vld [vmem:[#allocation2 + $0x60] sm:$0xff] }
  0xed   :  { %413 = vst [vmem:[#allocation2 + $0x88] sm:$0xc] %v391_v25 }
  0xee   :  { %435 = vst [vmem:[#allocation2 + $0xa8] sm:$0x30] %v391_v25  ;;  %v423_v34 = vrot.slane %v419_v29, 2  ;;  %v424_v35 = vrot.slane %v420_v30, 2  ;;  %v440_v38 = vrot.slane %v419_v29, 4  ;;  %v441_v41 = vrot.slane %v420_v30, 4 }
  0xef   :  { %v193_v26 = vpop.f32.mrf.mxu0  ;;  %465 = vst [vmem:[#allocation2 + $0xf0] sm:$0x3] %v391_v25 }
  0xf0   :  { %477 = vst [vmem:[#allocation2 + $0x50] sm:$0xc] %v391_v25  ;;  %v194_v43 = vadd.f32 %v4203_v24, %v193_v26 }
  0xf1   :  { %499 = vst [vmem:[#allocation2 + $0xc0] sm:$0x30] %v391_v25  ;;  %v3894_v25 = vld [vmem:[%s4955_s3 + $0x218] sm:$0xff] }
  0xf2   :  { %436 = vst [vmem:[#allocation2 + $0x88] sm:$0x30] %v423_v34  ;;  %v215_v21 = vmax.f32 %v194_v43, 0.0  ;;  %1317 = vmatpush.bf16.msra.mxu3 %v3894_v25  ;;  %v531_v43 = vld [vmem:[#allocation2 + $0x108] sm:$0xff] }
  0xf3   :  { %437 = vst [vmem:[#allocation2 + $0xd8] sm:$0x30] %v424_v35  ;;  %v3920_v25 = vld [vmem:[%s4957_s5 + $0xa8] sm:$0xff] }
  0xf4   :  { %454 = vst [vmem:[#allocation2 + $0xa8] sm:$0xc0] %v420_v30  ;;  %v458_v56 = vrot.slane %v215_v21, 2  ;;  %v472_v58 = vrot.slane %v215_v21, 4 }
  0xf5   :  { %455 = vst [vmem:[#allocation2 + $0x88] sm:$0xc0] %v440_v38 }
  0xf6   :  { %456 = vst [vmem:[#allocation2 + $0xd8] sm:$0xc0] %v441_v41  ;;  %1318 = vmatpush.bf16.msra.mxu3 %v3893_v31 }
  0xf7   :  { %v195_v37 = vpop.f32.mrf.mxu0  ;;  %500 = vst [vmem:[#allocation2 + $0x50] sm:$0x30] %v423_v34 }
  0xf8   :  { %v196_v42 = vadd.f32 %v4203_v24, %v195_v37  ;;  %501 = vst [vmem:[#allocation2 + $0xf0] sm:$0x30] %v424_v35  ;;  %v539_v35 = vld [vmem:[#allocation2 + $0xf8] sm:$0xff]  ;;  %v3892_v37 = vld [vmem:[%s4955_s3 + $0x208] sm:$0xff] }
  0xf9   :  { %518 = vst [vmem:[#allocation2 + $0xc0] sm:$0xc0] %v420_v30  ;;  %v3885_v30 = vld [vmem:[%s4955_s3 + $0x1d0] sm:$0xff] }
  0xfa   :  { %v216_v48 = vmax.f32 %v196_v42, 0.0  ;;  %519 = vst [vmem:[#allocation2 + $0x50] sm:$0xc0] %v440_v38  ;;  %1299 = vmatpush.bf16.msra.mxu2 %v3885_v30  ;;  %v540_v38 = vld [vmem:[#allocation2 + $0x38] sm:$0xff]  ;;  %v566_v42 = vpack.c.bf16 %v539_v35, %v530_v39  ;;  %1319 = vmatpush.bf16.msra.mxu3 %v3892_v37  ;;  %v3909_v37 = vld [vmem:[%s4957_s5 + $0x50] sm:$0xff] }
  0xfb   :  { %520 = vst [vmem:[#allocation2 + $0xf0] sm:$0xc0] %v441_v41  ;;  %v3875_v41 = vld [vmem:[%s4955_s3 + $0x180] sm:$0xff]  ;;  %v567_v44 = vpack.c.bf16 %v540_v38, %v531_v43  ;;  %v3902_v30 = vld [vmem:[%s4957_s5 + $0x18] sm:$0xff]  ;;  %v3917_v38 = vld [vmem:[%s4957_s5 + $0x90] sm:$0xff] }
  0xfc   :  { %v486_v53 = vrot.slane %v216_v48, 2  ;;  %v487_v57 = vrot.slane %v216_v48, 4  ;;  %467 = vst [vmem:[#allocation2 + $0x28] sm:$0x3] %v215_v21  ;;  %v568_v48 = vpack.c.bf16 %v541_v40, %v532_v45  ;;  %v3926_v35 = vld [vmem:[%s4957_s5 + $0xd8] sm:$0xff]  ;;  %v3925_v39 = vld [vmem:[%s4957_s5 + $0xd0] sm:$0xff] }
  0xfd   :  { %468 = vst [vmem:[#allocation2 + $0x100] sm:$0x3] %v458_v56  ;;  %v3900_v40 = vld [vmem:[%s4957_s5 + $0x8] sm:$0xff] }
  0xfe   :  { %479 = vst [vmem:[#allocation2 + $0xb8] sm:$0xc] %v215_v21  ;;  %v491_v60 = vrot.slane %v486_v53, 2  ;;  %v492_v0 = vrot.slane %v487_v57, 2  ;;  %v508_v6 = vrot.slane %v486_v53, 4  ;;  %v509_v7 = vrot.slane %v487_v57, 4  ;;  %1300 = vmatpush.bf16.msra.mxu2 %v3884_v36  ;;  %1320 = vmatpush.bf16.msra.mxu3 %v3891_v47 }
  0xff   :  { %v198_v51 = vpop.f32.mrf.mxu0  ;;  %480 = vst [vmem:[#allocation2 + $0x28] sm:$0xc] %v458_v56  ;;  %v548_v21 = vld [vmem:[#allocation2 + $0x58] sm:$0xff]  ;;  %v549_v53 = vld [vmem:[#allocation2 + $0xe0] sm:$0xff]  ;;  %v3901_v36 = vld [vmem:[%s4957_s5 + $0x10] sm:$0xff] }
 0x100   :  { %v199_v61 = vadd.f32 %v4203_v24, %v198_v51  ;;  %481 = vst [vmem:[#allocation2 + $0x100] sm:$0xc] %v472_v58  ;;  %v554_v2 = vld [vmem:[#allocation2 + $0xc0] sm:$0xff]  ;;  %v3916_v45 = vld [vmem:[%s4957_s5 + $0x88] sm:$0xff] }
 0x101   :  { %502 = vst [vmem:[#allocation2 + $0xb8] sm:$0x30] %v458_v56  ;;  %v572_v8 = vpack.c.bf16 %v554_v2, %v545_v1  ;;  %v555_v9 = vld [vmem:[#allocation2 + $0x50] sm:$0xff]  ;;  %v543_v58 = vld [vmem:[#allocation2 + $0x20] sm:$0xff]  ;;  %v3930_v2 = vld [vmem:[%s4957_s5 + $0xf8] sm:$0xff] }
 0x102   :  { %503 = vst [vmem:[#allocation2 + $0x28] sm:$0x30] %v491_v60  ;;  %v573_v12 = vpack.c.bf16 %v555_v9, %v546_v3  ;;  %v556_v13 = vld [vmem:[#allocation2 + $0xf0] sm:$0xff]  ;;  %v217_v14 = vmax.f32 %v199_v61, 0.0  ;;  %1301 = vmatpush.bf16.msra.mxu2 %v3883_v46  ;;  %v544_v60 = vld [vmem:[#allocation2 + $0xc8] sm:$0xff]  ;;  %v570_v63 = vpack.c.bf16 %v543_v58, %v534_v62  ;;  %2447 = vmatpush.bf16.msrb.mxu0 %v3930_v2  ;;  %v3899_v47 = vld [vmem:[%s4957_s5] sm:$0xff] }
 0x103   :  { %504 = vst [vmem:[#allocation2 + $0x100] sm:$0x30] %v492_v0  ;;  %1174 = vmatmul.bf16.gmra.mxu1 %v572_v8  ;;  %v574_v17 = vpack.c.bf16 %v556_v13, %v547_v10  ;;  %v535_v0 = vld [vmem:[#allocation2 + $0x80] sm:$0xff]  ;;  %v3929_v3 = vld [vmem:[%s4957_s5 + $0xf0] sm:$0xff]  ;;  %v552_v10 = vld [vmem:[#allocation2 + $0x88] sm:$0xff] }
 0x104   :  { %521 = vst [vmem:[#allocation2 + $0xb8] sm:$0xc0] %v487_v57  ;;  %1193 = vmatmul.bf16.gmra.mxu2 %v573_v12  ;;  %v461_v20 = vrot.slane %v217_v14, 2  ;;  %v474_v26 = vrot.slane %v217_v14, 4  ;;  %v542_v57 = vld [vmem:[#allocation2 + $0x78] sm:$0xff]  ;;  %v571_v1 = vpack.c.bf16 %v544_v60, %v535_v0  ;;  %v3924_v46 = vld [vmem:[%s4957_s5 + $0xc8] sm:$0xff] }
 0x105   :  { %522 = vst [vmem:[#allocation2 + $0x28] sm:$0xc0] %v508_v6  ;;  %1212 = vmatmul.bf16.gmra.mxu3 %v574_v17  ;;  %v569_v61 = vpack.c.bf16 %v542_v57, %v533_v59  ;;  %v3928_v6 = vld [vmem:[%s4957_s5 + $0xe8] sm:$0xff]  ;;  %v553_v12 = vld [vmem:[#allocation2 + $0xd8] sm:$0xff]  ;;  %v3927_v17 = vld [vmem:[%s4957_s5 + $0xe0] sm:$0xff] }
 0x106   :  { %523 = vst [vmem:[#allocation2 + $0x100] sm:$0xc0] %v509_v7  ;;  %2448 = vmatpush.bf16.msrb.mxu0 %v3929_v3  ;;  %v551_v7 = vld [vmem:[#allocation2 + $0xa8] sm:$0xff]  ;;  %v3945_v62 = vld [vmem:[%s4957_s5 + $0x170] sm:$0xff] }
 0x107   :  { %v200_v4 = vpop.f32.mrf.mxu0  ;;  %470 = vst [vmem:[#allocation2 + $0x40] sm:$0x3] %v217_v14  ;;  %v3961_v0 = vld [vmem:[%s4957_s5 + $0x1f0] sm:$0xff]  ;;  %v3944_v2 = vld [vmem:[%s4957_s5 + $0x168] sm:$0xff] }
 0x108   :  { %v201_v11 = vadd.f32 %v4203_v24, %v200_v4  ;;  %v3878_v24 = vld [vmem:[%s4955_s3 + $0x198] sm:$0xff]  ;;  %471 = vst [vmem:[#allocation2 + $0xe8] sm:$0x3] %v461_v20 }
 0x109   :  { %1279 = vmatpush.bf16.msra.mxu1 %v3878_v24  ;;  %482 = vst [vmem:[#allocation2] sm:$0xc] %v217_v14  ;;  %v3906_v14 = vld [vmem:[%s4957_s5 + $0x38] sm:$0xff]  ;;  %v3913_v24 = vld [vmem:[%s4957_s5 + $0x70] sm:$0xff] }
 0x10a   :  { %v218_v18 = vmax.f32 %v201_v11, 0.0  ;;  %483 = vst [vmem:[#allocation2 + $0x40] sm:$0xc] %v461_v20  ;;  %2449 = vmatpush.bf16.msrb.mxu0 %v3928_v6 }
 0x10b   :  { %484 = vst [vmem:[#allocation2 + $0xe8] sm:$0xc] %v474_v26  ;;  %v557_v49 = vld [vmem:[#allocation2 + $0xb8] sm:$0xff]  ;;  %v3903_v26 = vld [vmem:[%s4957_s5 + $0x20] sm:$0xff] }
 0x10c   :  { %v489_v19 = vrot.slane %v218_v18, 2  ;;  %v490_v22 = vrot.slane %v218_v18, 4  ;;  %505 = vst [vmem:[#allocation2] sm:$0x30] %v461_v20  ;;  %v558_v50 = vld [vmem:[#allocation2 + $0x28] sm:$0xff]  ;;  %v575_v52 = vpack.c.bf16 %v557_v49, %v548_v21  ;;  %v3905_v18 = vld [vmem:[%s4957_s5 + $0x30] sm:$0xff] }
 0x10d   :  { %1280 = vmatpush.bf16.msra.mxu1 %v3877_v27  ;;  %v559_v51 = vld [vmem:[#allocation2 + $0x100] sm:$0xff]  ;;  %v576_v54 = vpack.c.bf16 %v558_v50, %v549_v53  ;;  %v3904_v20 = vld [vmem:[%s4957_s5 + $0x28] sm:$0xff] }
 0x10e   :  { %v493_v28 = vrot.slane %v489_v19, 2  ;;  %v494_v29 = vrot.slane %v490_v22, 2  ;;  %v510_v32 = vrot.slane %v489_v19, 4  ;;  %v511_v34 = vrot.slane %v490_v22, 4  ;;  %524 = vst [vmem:[#allocation2] sm:$0xc0] %v490_v22  ;;  %2450 = vmatpush.bf16.msrb.mxu0 %v3927_v17 }
 0x10f   :  { %v577_v56 = vpack.c.bf16 %v559_v51, %v550_v55  ;;  %v3921_v19 = vld [vmem:[%s4957_s5 + $0xb0] sm:$0xff]  ;;  %v3911_v27 = vld [vmem:[%s4957_s5 + $0x60] sm:$0xff]  ;;  %v3962_v55 = vld [vmem:[%s4957_s5 + $0x1f8] sm:$0xff] }
 0x110   :  { %506 = vst [vmem:[#allocation2 + $0x40] sm:$0x30] %v493_v28  ;;  %v3919_v28 = vld [vmem:[%s4957_s5 + $0xa0] sm:$0xff]  ;;  %v3950_v17 = vld [vmem:[%s4957_s5 + $0x198] sm:$0xff] }
 0x111   :  { %507 = vst [vmem:[#allocation2 + $0xe8] sm:$0x30] %v494_v29  ;;  %1281 = vmatpush.bf16.msra.mxu1 %v3876_v33  ;;  %v3910_v33 = vld [vmem:[%s4957_s5 + $0x58] sm:$0xff]  ;;  %v4544_v49 = vld [vmem:[%s4956_s4] ss:$0 sm:$0xff] }
 0x112   :  { %525 = vst [vmem:[#allocation2 + $0x40] sm:$0xc0] %v510_v32  ;;  %2451 = vmatpush.bf16.msrb.mxu0 %v3926_v35  ;;  %v3907_v50 = vld [vmem:[%s4957_s5 + $0x40] sm:$0xff]  ;;  %v3956_v35 = vld [vmem:[%s4957_s5 + $0x1c8] sm:$0xff] }
 0x113   :  { %526 = vst [vmem:[#allocation2 + $0xe8] sm:$0xc0] %v511_v34  ;;  %1226 = vmatmul.bf16.vlgmr.msrb.gmra.mxu1 %v566_v42  ;;  %v3918_v34 = vld [vmem:[%s4957_s5 + $0x98] sm:$0xff]  ;;  %v3915_v21 = vld [vmem:[%s4957_s5 + $0x80] sm:$0xff] }
 0x114   :  { %1245 = vmatmul.bf16.vlgmr.msrb.gmra.mxu2 %v567_v44  ;;  %v3908_v44 = vld [vmem:[%s4957_s5 + $0x48] sm:$0xff]  ;;  %v3923_v51 = vld [vmem:[%s4957_s5 + $0xc0] sm:$0xff] }
 0x115   :  { %1282 = vmatpush.bf16.msra.mxu1 %v3875_v41  ;;  %1264 = vmatmul.bf16.vlgmr.msrb.gmra.mxu3 %v568_v48  ;;  %v560_v4 = vld [vmem:[#allocation2] sm:$0xff]  ;;  %v3938_v48 = vld [vmem:[%s4957_s5 + $0x138] sm:$0xff] }
 0x116   :  { %v578_v9 = vpack.c.bf16 %v560_v4, %v551_v7  ;;  %2421 = vmatpush.bf16.msrb.mxu2 %v3914_v15  ;;  %2434 = vmatpush.bf16.msrb.mxu3 %v3922_v16  ;;  %v3952_v4 = vld [vmem:[%s4957_s5 + $0x1a8] sm:$0xff]  ;;  %v3934_v15 = vld [vmem:[%s4957_s5 + $0x118] sm:$0xff] }
 0x117   :  { %2452 = vmatpush.bf16.msrb.mxu0 %v3925_v39  ;;  %v3942_v16 = vld [vmem:[%s4957_s5 + $0x158] sm:$0xff]  ;;  %v3939_v39 = vld [vmem:[%s4957_s5 + $0x140] sm:$0xff] }
 0x119   :  { %v561_v5 = vld [vmem:[#allocation2 + $0x40] sm:$0xff]  ;;  %2408 = vmatpush.bf16.msrb.mxu1 %v3906_v14 }
 0x11a   :  { %v562_v8 = vld [vmem:[#allocation2 + $0xe8] sm:$0xff]  ;;  %v579_v11 = vpack.c.bf16 %v561_v5, %v552_v10  ;;  %2422 = vmatpush.bf16.msrb.mxu2 %v3913_v24  ;;  %2435 = vmatpush.bf16.msrb.mxu3 %v3921_v19  ;;  %v3959_v14 = vld [vmem:[%s4957_s5 + $0x1e0] sm:$0xff] }
 0x11b   :  { %v580_v13 = vpack.c.bf16 %v562_v8, %v553_v12  ;;  %2453 = vmatpush.bf16.msrb.mxu0 %v3924_v46  ;;  %v3960_v5 = vld [vmem:[%s4957_s5 + $0x1e8] sm:$0xff]  ;;  %v3943_v12 = vld [vmem:[%s4957_s5 + $0x160] sm:$0xff] }
 0x11d   :  { %2409 = vmatpush.bf16.msrb.mxu1 %v3905_v18  ;;  %v3958_v18 = vld [vmem:[%s4957_s5 + $0x1d8] sm:$0xff] }
 0x11e   :  { %2423 = vmatpush.bf16.msrb.mxu2 %v3912_v23  ;;  %2436 = vmatpush.bf16.msrb.mxu3 %v3920_v25  ;;  %v3933_v23 = vld [vmem:[%s4957_s5 + $0x110] sm:$0xff] }
 0x11f   :  { %2454 = vmatpush.bf16.msrb.mxu0 %v3923_v51  ;;  %v3941_v25 = vld [vmem:[%s4957_s5 + $0x150] sm:$0xff] }
 0x121   :  { %2410 = vmatpush.bf16.msrb.mxu1 %v3904_v20 }
 0x122   :  { %2424 = vmatpush.bf16.msrb.mxu2 %v3911_v27  ;;  %2437 = vmatpush.bf16.msrb.mxu3 %v3919_v28  ;;  %v3957_v27 = vld [vmem:[%s4957_s5 + $0x1d0] sm:$0xff]  ;;  %v3932_v28 = vld [vmem:[%s4957_s5 + $0x108] sm:$0xff] }
 0x123   :  { %1231 = vmatmul.bf16.gmra.mxu1 %v575_v52  ;;  %v3946_v52 = vld [vmem:[%s4957_s5 + $0x178] sm:$0xff]  ;;  %2499 = vmatpush.bf16.msra.mxu0 %v3962_v55 }
 0x124   :  { %1250 = vmatmul.bf16.gmra.mxu2 %v576_v54  ;;  %v3954_v54 = vld [vmem:[%s4957_s5 + $0x1b8] sm:$0xff] }
 0x125   :  { %1269 = vmatmul.bf16.gmra.mxu3 %v577_v56  ;;  %2411 = vmatpush.bf16.msrb.mxu1 %v3903_v26  ;;  %v3949_v26 = vld [vmem:[%s4957_s5 + $0x190] sm:$0xff] }
 0x126   :  { %2425 = vmatpush.bf16.msrb.mxu2 %v3910_v33  ;;  %2438 = vmatpush.bf16.msrb.mxu3 %v3918_v34  ;;  %v3948_v34 = vld [vmem:[%s4957_s5 + $0x188] sm:$0xff] }
 0x127   :  { %2500 = vmatpush.bf16.msra.mxu0 %v3961_v0 }
 0x129   :  { %2412 = vmatpush.bf16.msrb.mxu1 %v3902_v30  ;;  %v3940_v30 = vld [vmem:[%s4957_s5 + $0x148] sm:$0xff] }
 0x12a   :  { %2426 = vmatpush.bf16.msrb.mxu2 %v3909_v37  ;;  %2439 = vmatpush.bf16.msrb.mxu3 %v3917_v38  ;;  %v3931_v38 = vld [vmem:[%s4957_s5 + $0x100] sm:$0xff] }
 0x12b   :  { %2501 = vmatpush.bf16.msra.mxu0 %v3960_v5 }
 0x12d   :  { %2413 = vmatpush.bf16.msrb.mxu1 %v3901_v36 }
 0x12e   :  { %2427 = vmatpush.bf16.msrb.mxu2 %v3908_v44  ;;  %2440 = vmatpush.bf16.msrb.mxu3 %v3916_v45 }
 0x12f   :  { %2502 = vmatpush.bf16.msra.mxu0 %v3959_v14  ;;  %v3986_v14 = vld [vmem:[%s4957_s5 + $0x2b8] sm:$0xff] }
 0x131   :  { %2414 = vmatpush.bf16.msrb.mxu1 %v3900_v40  ;;  %v3947_v40 = vld [vmem:[%s4957_s5 + $0x180] sm:$0xff] }
 0x132   :  { %2428 = vmatpush.bf16.msrb.mxu2 %v3907_v50  ;;  %2441 = vmatpush.bf16.msrb.mxu3 %v3915_v21 }
 0x133   :  { %1283 = vmatmul.bf16.vlgmr.msra.gmra.mxu1 %v569_v61  ;;  %v3937_v61 = vld [vmem:[%s4957_s5 + $0x130] sm:$0xff]  ;;  %2503 = vmatpush.bf16.msra.mxu0 %v3958_v18 }
 0x134   :  { %1302 = vmatmul.bf16.vlgmr.msra.gmra.mxu2 %v570_v63  ;;  %v3953_v63 = vld [vmem:[%s4957_s5 + $0x1b0] sm:$0xff] }
 0x135   :  { %1321 = vmatmul.bf16.vlgmr.msra.gmra.mxu3 %v571_v1  ;;  %2415 = vmatpush.bf16.msrb.mxu1 %v3899_v47  ;;  %v3936_v1 = vld [vmem:[%s4957_s5 + $0x128] sm:$0xff]  ;;  %v3977_v18 = vld [vmem:[%s4957_s5 + $0x270] sm:$0xff] }
 0x136   :  { %2473 = vmatpush.bf16.msra.mxu2 %v3946_v52  ;;  %2486 = vmatpush.bf16.msra.mxu3 %v3954_v54 }
 0x137   :  { %2504 = vmatpush.bf16.msra.mxu0 %v3957_v27 }
 0x139   :  { %2460 = vmatpush.bf16.msra.mxu1 %v3938_v48 }
 0x13a   :  { %2474 = vmatpush.bf16.msra.mxu2 %v3945_v62  ;;  %2487 = vmatpush.bf16.msra.mxu3 %v3953_v63 }
 0x13b   :  { %2505 = vmatpush.bf16.msra.mxu0 %v3956_v35 }
 0x13d   :  { %2461 = vmatpush.bf16.msra.mxu1 %v3937_v61 }
 0x13e   :  { %v4472_v22 = vpop.f32.mrf.mxu1  ;;  %2475 = vmatpush.bf16.msra.mxu2 %v3944_v2  ;;  %2488 = vmatpush.bf16.msra.mxu3 %v3952_v4  ;;  %v3970_v4 = vld [vmem:[%s4957_s5 + $0x238] sm:$0xff] }
 0x13f   :  { %v1171_v44 = vadd.f32 %v4544_v49, %v4472_v22 }
 0x141   :  { %2462 = vmatpush.bf16.msra.mxu1 %v3936_v1 }
 0x142   :  { %2476 = vmatpush.bf16.msra.mxu2 %v3943_v12 }
 0x143   :  { %1288 = vmatmul.bf16.gmra.mxu1 %v578_v9 }
 0x144   :  { %1307 = vmatmul.bf16.gmra.mxu2 %v579_v11  ;;  %v3935_v11 = vld [vmem:[%s4957_s5 + $0x120] sm:$0xff] }
 0x145   :  { %1326 = vmatmul.bf16.gmra.mxu3 %v580_v13  ;;  %v4489_v29 = vpop.f32.mrf.mxu2  ;;  %v3951_v13 = vld [vmem:[%s4957_s5 + $0x1a0] sm:$0xff]  ;;  %2463 = vmatpush.bf16.msra.mxu1 %v3935_v11 }
 0x146   :  { %v4494_v31 = vpop.f32.mrf.mxu3  ;;  %v4496_v32 = vpop.f32.mrf.mxu1  ;;  %2489 = vmatpush.bf16.msra.mxu3 %v3951_v13  ;;  %2477 = vmatpush.bf16.msra.mxu2 %v3942_v16  ;;  %v1190_v46 = vadd.f32 %v4489_v29, %v1171_v44  ;;  %v3969_v16 = vld [vmem:[%s4957_s5 + $0x230] sm:$0xff] }
 0x147   :  { %v1173_v51 = vadd.f32 %v4544_v49, %v4496_v32 }
 0x148   :  { %v1209_v21 = vadd.f32 %v4494_v31, %v1190_v46 }
 0x149   :  { %2464 = vmatpush.bf16.msra.mxu1 %v3934_v15  ;;  %v3994_v15 = vld [vmem:[%s4957_s5 + $0x2f8] sm:$0xff] }
 0x14a   :  { %2490 = vmatpush.bf16.msra.mxu3 %v3950_v17  ;;  %2478 = vmatpush.bf16.msra.mxu2 %v3941_v25 }
 0x14d   :  { %v4522_v41 = vpop.f32.mrf.mxu2  ;;  %2465 = vmatpush.bf16.msra.mxu1 %v3933_v23  ;;  %v3968_v23 = vld [vmem:[%s4957_s5 + $0x228] sm:$0xff] }
 0x14e   :  { %v4524_v42 = vpop.f32.mrf.mxu3  ;;  %2491 = vmatpush.bf16.msra.mxu3 %v3949_v26  ;;  %2479 = vmatpush.bf16.msra.mxu2 %v3940_v30  ;;  %v1192_v22 = vadd.f32 %v4522_v41, %v1173_v51  ;;  %v3976_v26 = vld [vmem:[%s4957_s5 + $0x268] sm:$0xff] }
 0x14f   :  { %v3992_v30 = vld [vmem:[%s4957_s5 + $0x2e8] sm:$0xff] }
 0x150   :  { %v1211_v29 = vadd.f32 %v4524_v42, %v1192_v22 }
 0x151   :  { %2466 = vmatpush.bf16.msra.mxu1 %v3932_v28  ;;  %v3984_v28 = vld [vmem:[%s4957_s5 + $0x2a8] sm:$0xff] }
 0x152   :  { %2492 = vmatpush.bf16.msra.mxu3 %v3948_v34  ;;  %2480 = vmatpush.bf16.msra.mxu2 %v3939_v39  ;;  %v3975_v34 = vld [vmem:[%s4957_s5 + $0x260] sm:$0xff] }
 0x155   :  { %2467 = vmatpush.bf16.msra.mxu1 %v3931_v38 }
 0x156   :  { %2493 = vmatpush.bf16.msra.mxu3 %v3947_v40 }
 0x180   :  { %v1175_v43 = vpop.f32.mrf.mxu1 }
 0x181   :  { %v1176_v53 = vadd.f32 %v4544_v49, %v1175_v43  ;;  %v3955_v43 = vld [vmem:[%s4957_s5 + $0x1c0] sm:$0xff] }
 0x182   :  { %2506 = vmatpush.bf16.msra.mxu0 %v3955_v43 }
 0x187   :  { %v1194_v56 = vpop.f32.mrf.mxu2 }
 0x188   :  { %v1177_v57 = vpop.f32.mrf.mxu1  ;;  %v1195_v58 = vadd.f32 %v1194_v56, %v1176_v53  ;;  %v1213_v59 = vpop.f32.mrf.mxu3 }
 0x189   :  { %v1178_v3 = vadd.f32 %v4544_v49, %v1177_v57 }
 0x18a   :  { %v4565_v60 = vadd.f32 %v1213_v59, %v1195_v58 }
 0x18f   :  { %v1196_v6 = vpop.f32.mrf.mxu2 }
 0x190   :  { %v1197_v7 = vadd.f32 %v1196_v6, %v1178_v3  ;;  %v1215_v8 = vpop.f32.mrf.mxu3  ;;  %v1227_v9 = vpop.f32.mrf.mxu1 }
 0x191   :  { %v1228_v52 = vadd.f32 %v1227_v9, %v1209_v21  ;;  %v3978_v9 = vld [vmem:[%s4957_s5 + $0x278] sm:$0xff] }
 0x192   :  { %v1216_v10 = vadd.f32 %v1215_v8, %v1197_v7  ;;  %v3974_v21 = vld [vmem:[%s4957_s5 + $0x258] sm:$0xff] }
 0x197   :  { %v1246_v24 = vpop.f32.mrf.mxu2 }
 0x198   :  { %v1229_v19 = vpop.f32.mrf.mxu1  ;;  %v1265_v20 = vpop.f32.mrf.mxu3  ;;  %v1247_v54 = vadd.f32 %v1246_v24, %v1228_v52 }
 0x199   :  { %v1230_v61 = vadd.f32 %v1229_v19, %v1211_v29  ;;  %v3985_v19 = vld [vmem:[%s4957_s5 + $0x2b0] sm:$0xff] }
 0x19a   :  { %v1266_v59 = vadd.f32 %v1265_v20, %v1247_v54  ;;  %v3993_v20 = vld [vmem:[%s4957_s5 + $0x2f0] sm:$0xff] }
 0x19b   :  { %v3965_v54 = vld [vmem:[%s4957_s5 + $0x210] sm:$0xff] }
 0x19f   :  { %v1248_v33 = vpop.f32.mrf.mxu2 }
 0x1a0   :  { %v4640_v36 = vpop.f32.mrf.mxu1  ;;  %v1267_v37 = vpop.f32.mrf.mxu3  ;;  %v1249_v63 = vadd.f32 %v1248_v33, %v1230_v61  ;;  %v3964_v61 = vld [vmem:[%s4957_s5 + $0x208] sm:$0xff] }
 0x1a1   :  { %v1233_v25 = vadd.f32 %v4640_v36, %v4565_v60  ;;  %v3967_v60 = vld [vmem:[%s4957_s5 + $0x220] sm:$0xff] }
 0x1a2   :  { %v1268_v2 = vadd.f32 %v1267_v37, %v1249_v63  ;;  %v3983_v36 = vld [vmem:[%s4957_s5 + $0x2a0] sm:$0xff]  ;;  %v3980_v63 = vld [vmem:[%s4957_s5 + $0x288] sm:$0xff] }
 0x1a3   :  { %v3991_v37 = vld [vmem:[%s4957_s5 + $0x2e0] sm:$0xff] }
 0x1a7   :  { %v4656_v45 = vpop.f32.mrf.mxu2 }
 0x1a8   :  { %v1234_v47 = vpop.f32.mrf.mxu1  ;;  %v4659_v48 = vpop.f32.mrf.mxu3  ;;  %v1252_v33 = vadd.f32 %v4656_v45, %v1233_v25  ;;  %v3966_v45 = vld [vmem:[%s4957_s5 + $0x218] sm:$0xff]  ;;  %v4015_v25 = vld [vmem:[%s4957_s5 + $0x3a0] sm:$0xff] }
 0x1a9   :  { %v1235_v50 = vadd.f32 %v1234_v47, %v1216_v10 }
 0x1aa   :  { %v1271_v39 = vadd.f32 %v4659_v48, %v1252_v33  ;;  %v3982_v48 = vld [vmem:[%s4957_s5 + $0x298] sm:$0xff] }
 0x1ab   :  { %v4006_v33 = vld [vmem:[%s4957_s5 + $0x358] sm:$0xff] }
 0x1af   :  { %v1253_v53 = vpop.f32.mrf.mxu2 }
 0x1b0   :  { %v1254_v55 = vadd.f32 %v1253_v53, %v1235_v50  ;;  %v1272_v56 = vpop.f32.mrf.mxu3  ;;  %v1284_v57 = vpop.f32.mrf.mxu1  ;;  %v3990_v53 = vld [vmem:[%s4957_s5 + $0x2d8] sm:$0xff] }
 0x1b1   :  { %v1285_v62 = vadd.f32 %v1284_v57, %v1266_v59  ;;  %v3981_v57 = vld [vmem:[%s4957_s5 + $0x290] sm:$0xff] }
 0x1b2   :  { %v4665_v58 = vadd.f32 %v1272_v56, %v1254_v55  ;;  %v3973_v56 = vld [vmem:[%s4957_s5 + $0x250] sm:$0xff] }
 0x1b3   :  { %v3989_v59 = vld [vmem:[%s4957_s5 + $0x2d0] sm:$0xff] }
 0x1b7   :  { %v1303_v31 = vpop.f32.mrf.mxu2 }
 0x1b8   :  { %v1304_v0 = vadd.f32 %v1303_v31, %v1285_v62  ;;  %v1322_v1 = vpop.f32.mrf.mxu3  ;;  %v1286_v32 = vpop.f32.mrf.mxu1  ;;  %v3972_v62 = vld [vmem:[%s4957_s5 + $0x248] sm:$0xff] }
 0x1b9   :  { %v1287_v3 = vadd.f32 %v1286_v32, %v1268_v2  ;;  %v4002_v32 = vld [vmem:[%s4957_s5 + $0x338] sm:$0xff]  ;;  %v3979_v2 = vld [vmem:[%s4957_s5 + $0x280] sm:$0xff] }
 0x1ba   :  { %v1323_v49 = vadd.f32 %v1322_v1, %v1304_v0  ;;  %v3988_v0 = vld [vmem:[%s4957_s5 + $0x2c8] sm:$0xff]  ;;  %v3963_v1 = vld [vmem:[%s4957_s5 + $0x200] sm:$0xff] }
 0x1bc   :  { %v1332_v41 = vmax.f32 %v1323_v49, 0.0  ;;  %v3971_v49 = vld [vmem:[%s4957_s5 + $0x240] sm:$0xff] }
 0x1be   :  { %v1364_v5 = vpack.c.bf16 %v1332_v41, %v1332_v41  ;;  %v1337_v6 = vrot.slane %v1332_v41, 2  ;;  %v1339_v7 = vrot.slane %v1332_v41, 4  ;;  %v1341_v42 = vrot.slane %v1332_v41, 6  ;;  %v3987_v41 = vld [vmem:[%s4957_s5 + $0x2c0] sm:$0xff] }
 0x1bf   :  { %v1305_v8 = vpop.f32.mrf.mxu2 }
 0x1c0   :  { %v1306_v10 = vadd.f32 %v1305_v8, %v1287_v3  ;;  %2416 = vmatmul.bf16.vlgmr.msrb.gmra.mxu1 %v1364_v5  ;;  %v1365_v11 = vpack.c.bf16 %v1337_v6, %v1337_v6  ;;  %v1366_v12 = vpack.c.bf16 %v1339_v7, %v1339_v7  ;;  %v1367_v13 = vpack.c.bf16 %v1341_v42, %v1341_v42  ;;  %v1324_v17 = vpop.f32.mrf.mxu3  ;;  %v1289_v35 = vpop.f32.mrf.mxu1  ;;  %v4010_v3 = vld [vmem:[%s4957_s5 + $0x378] sm:$0xff]  ;;  %v4001_v8 = vld [vmem:[%s4957_s5 + $0x330] sm:$0xff] }
 0x1c1   :  { %2512 = vmatpush.bf16.msrb.mxu1 %v3970_v4  ;;  %v1290_v46 = vadd.f32 %v1289_v35, %v1271_v39  ;;  %v4018_v5 = vld [vmem:[%s4957_s5 + $0x3b8] sm:$0xff]  ;;  %v3997_v35 = vld [vmem:[%s4957_s5 + $0x310] sm:$0xff] }
 0x1c2   :  { %2429 = vmatmul.bf16.vlgmr.msrb.gmra.mxu2 %v1365_v11  ;;  %2442 = vmatmul.bf16.vlgmr.msrb.gmra.mxu3 %v1366_v12  ;;  %v1325_v24 = vadd.f32 %v1324_v17, %v1306_v10  ;;  %v4026_v6 = vld [vmem:[%s4957_s5 + $0x3f8] sm:$0xff]  ;;  %v4009_v11 = vld [vmem:[%s4957_s5 + $0x370] sm:$0xff]  ;;  %v4008_v17 = vld [vmem:[%s4957_s5 + $0x368] sm:$0xff] }
 0x1c3   :  { %2455 = vmatmul.bf16.vlgmr.msrb.gmra.mxu0 %v1367_v13  ;;  %2525 = vmatpush.bf16.msrb.mxu2 %v3978_v9  ;;  %v4017_v13 = vld [vmem:[%s4957_s5 + $0x3b0] sm:$0xff] }
 0x1c4   :  { %2538 = vmatpush.bf16.msrb.mxu3 %v3986_v14  ;;  %2551 = vmatpush.bf16.msrb.mxu0 %v3994_v15  ;;  %v1333_v27 = vmax.f32 %v1325_v24, 0.0  ;;  %v4025_v14 = vld [vmem:[%s4957_s5 + $0x3f0] sm:$0xff]  ;;  %v4024_v24 = vld [vmem:[%s4957_s5 + $0x3e8] sm:$0xff] }
 0x1c5   :  { %2513 = vmatpush.bf16.msrb.mxu1 %v3969_v16  ;;  %v4000_v16 = vld [vmem:[%s4957_s5 + $0x328] sm:$0xff]  ;;  %v4013_v39 = vld [vmem:[%s4957_s5 + $0x390] sm:$0xff] }
 0x1c6   :  { %v1344_v38 = vrot.slane %v1333_v27, 2  ;;  %v1346_v40 = vrot.slane %v1333_v27, 4  ;;  %v1348_v43 = vrot.slane %v1333_v27, 6  ;;  %v1368_v47 = vpack.c.bf16 %v1333_v27, %v1333_v27 }
 0x1c7   :  { %2526 = vmatpush.bf16.msrb.mxu2 %v3977_v18  ;;  %v1308_v44 = vpop.f32.mrf.mxu2  ;;  %v4016_v18 = vld [vmem:[%s4957_s5 + $0x3a8] sm:$0xff] }
 0x1c8   :  { %2539 = vmatpush.bf16.msrb.mxu3 %v3985_v19  ;;  %2552 = vmatpush.bf16.msrb.mxu0 %v3993_v20  ;;  %v1369_v50 = vpack.c.bf16 %v1344_v38, %v1344_v38  ;;  %v1309_v51 = vadd.f32 %v1308_v44, %v1290_v46  ;;  %v1370_v52 = vpack.c.bf16 %v1346_v40, %v1346_v40  ;;  %v1327_v55 = vpop.f32.mrf.mxu3  ;;  %v3999_v19 = vld [vmem:[%s4957_s5 + $0x320] sm:$0xff]  ;;  %v1291_v20 = vpop.f32.mrf.mxu1  ;;  %v4021_v40 = vld [vmem:[%s4957_s5 + $0x3d0] sm:$0xff]  ;;  %v4004_v44 = vld [vmem:[%s4957_s5 + $0x348] sm:$0xff] }
 0x1c9   :  { %2514 = vmatpush.bf16.msrb.mxu1 %v3968_v23  ;;  %v1371_v22 = vpack.c.bf16 %v1348_v43, %v1348_v43  ;;  %v4007_v23 = vld [vmem:[%s4957_s5 + $0x360] sm:$0xff]  ;;  %v3996_v43 = vld [vmem:[%s4957_s5 + $0x308] sm:$0xff] }
 0x1ca   :  { %v1328_v29 = vadd.f32 %v1327_v55, %v1309_v51  ;;  %v4012_v46 = vld [vmem:[%s4957_s5 + $0x388] sm:$0xff]  ;;  %v4019_v51 = vld [vmem:[%s4957_s5 + $0x3c0] sm:$0xff] }
 0x1cb   :  { %2527 = vmatpush.bf16.msrb.mxu2 %v3976_v26  ;;  %v4023_v26 = vld [vmem:[%s4957_s5 + $0x3e0] sm:$0xff] }
 0x1cc   :  { %2540 = vmatpush.bf16.msrb.mxu3 %v3984_v28  ;;  %2553 = vmatpush.bf16.msrb.mxu0 %v3992_v30  ;;  %v1334_v31 = vmax.f32 %v1328_v29, 0.0  ;;  %v1292_v28 = vadd.f32 %v1291_v20, %v4665_v58  ;;  %v3998_v30 = vld [vmem:[%s4957_s5 + $0x318] sm:$0xff] }
 0x1cd   :  { %2515 = vmatpush.bf16.msrb.mxu1 %v3967_v60  ;;  %v4022_v58 = vld [vmem:[%s4957_s5 + $0x3d8] sm:$0xff] }
 0x1ce   :  { %v1351_v4 = vrot.slane %v1334_v31, 2  ;;  %v1353_v7 = vrot.slane %v1334_v31, 4  ;;  %v1355_v42 = vrot.slane %v1334_v31, 6  ;;  %v1372_v9 = vpack.c.bf16 %v1334_v31, %v1334_v31 }
 0x1cf   :  { %2528 = vmatpush.bf16.msrb.mxu2 %v3975_v34  ;;  %v1310_v27 = vpop.f32.mrf.mxu2  ;;  %v4014_v34 = vld [vmem:[%s4957_s5 + $0x398] sm:$0xff] }
 0x1d0   :  { %2541 = vmatpush.bf16.msrb.mxu3 %v3983_v36  ;;  %2554 = vmatpush.bf16.msrb.mxu0 %v3991_v37  ;;  %v1373_v10 = vpack.c.bf16 %v1351_v4, %v1351_v4  ;;  %v1374_v12 = vpack.c.bf16 %v1353_v7, %v1353_v7  ;;  %v1375_v15 = vpack.c.bf16 %v1355_v42, %v1355_v42  ;;  %v1329_v36 = vpop.f32.mrf.mxu3  ;;  %v4005_v37 = vld [vmem:[%s4957_s5 + $0x350] sm:$0xff]  ;;  %v4032_v4 = vld [vmem:[%s4960_s7 + $0x28] sm:$0xff]  ;;  %v4054_v42 = vld [vmem:[%s4958_s6] ss:$0 sm:$0xff] }
 0x1d1   :  { %2468 = vmatmul.bf16.vlgmr.msra.gmra.mxu1 %v1368_v47  ;;  %v1311_v60 = vadd.f32 %v1310_v27, %v1292_v28  ;;  %v4020_v47 = vld [vmem:[%s4957_s5 + $0x3c8] sm:$0xff]  ;;  %v4027_v28 = vld [vmem:[%s4960_s7] sm:$0xff] }
 0x1d2   :  { %2516 = vmatpush.bf16.msrb.mxu1 %v3966_v45  ;;  %2481 = vmatmul.bf16.vlgmr.msra.gmra.mxu2 %v1369_v50  ;;  %v3995_v50 = vld [vmem:[%s4957_s5 + $0x300] sm:$0xff] }
 0x1d3   :  { %2494 = vmatmul.bf16.vlgmr.msra.gmra.mxu3 %v1370_v52  ;;  %2507 = vmatmul.bf16.vlgmr.msra.gmra.mxu0 %v1371_v22  ;;  %v1330_v38 = vadd.f32 %v1329_v36, %v1311_v60  ;;  %v4040_v36 = vld [vmem:[%s4961_s9 + $0x28] sm:$0xff] }
 0x1d4   :  { %2529 = vmatpush.bf16.msrb.mxu2 %v3974_v21  ;;  %2542 = vmatpush.bf16.msrb.mxu3 %v3982_v48  ;;  %v4003_v21 = vld [vmem:[%s4957_s5 + $0x340] sm:$0xff] }
 0x1d5   :  { %2555 = vmatpush.bf16.msrb.mxu0 %v3990_v53  ;;  %v1335_v45 = vmax.f32 %v1330_v38, 0.0  ;;  %v4011_v48 = vld [vmem:[%s4957_s5 + $0x380] sm:$0xff] }
 0x1d6   :  { %2517 = vmatpush.bf16.msrb.mxu1 %v3965_v54 }
 0x1d7   :  { %v1358_v52 = vrot.slane %v1335_v45, 2  ;;  %v1360_v22 = vrot.slane %v1335_v45, 4  ;;  %v1362_v53 = vrot.slane %v1335_v45, 6  ;;  %v1376_v54 = vpack.c.bf16 %v1335_v45, %v1335_v45 }
 0x1d8   :  { %2530 = vmatpush.bf16.msrb.mxu2 %v3973_v56  ;;  %2543 = vmatpush.bf16.msrb.mxu3 %v3981_v57 }
 0x1d9   :  { %2556 = vmatpush.bf16.msrb.mxu0 %v3989_v59  ;;  %v1377_v55 = vpack.c.bf16 %v1358_v52, %v1358_v52  ;;  %v1378_v56 = vpack.c.bf16 %v1360_v22, %v1360_v22  ;;  %v1379_v57 = vpack.c.bf16 %v1362_v53, %v1362_v53 }
 0x1da   :  { %2518 = vmatpush.bf16.msrb.mxu1 %v3964_v61 }
 0x1dc   :  { %2531 = vmatpush.bf16.msrb.mxu2 %v3972_v62  ;;  %2544 = vmatpush.bf16.msrb.mxu3 %v3980_v63 }
 0x1dd   :  { %2557 = vmatpush.bf16.msrb.mxu0 %v3988_v0 }
 0x1de   :  { %2519 = vmatpush.bf16.msrb.mxu1 %v3963_v1 }
 0x1e0   :  { %2532 = vmatpush.bf16.msrb.mxu2 %v3971_v49  ;;  %2545 = vmatpush.bf16.msrb.mxu3 %v3979_v2  ;;  %v4034_v49 = vld [vmem:[%s4960_s7 + $0x38] sm:$0xff] }
 0x1e1   :  { %2558 = vmatpush.bf16.msrb.mxu0 %v3987_v41  ;;  %2520 = vmatmul.bf16.vlgmr.msrb.gmra.mxu1 %v1372_v9  ;;  %v4033_v41 = vld [vmem:[%s4960_s7 + $0x30] sm:$0xff]  ;;  %v4031_v9 = vld [vmem:[%s4960_s7 + $0x20] sm:$0xff] }
 0x1e2   :  { %2564 = vmatpush.bf16.msra.mxu1 %v4002_v32 }
 0x1e3   :  { %2533 = vmatmul.bf16.vlgmr.msrb.gmra.mxu2 %v1373_v10  ;;  %2546 = vmatmul.bf16.vlgmr.msrb.gmra.mxu3 %v1374_v12  ;;  %v4030_v12 = vld [vmem:[%s4960_s7 + $0x18] sm:$0xff] }
 0x1e4   :  { %2577 = vmatpush.bf16.msra.mxu2 %v4010_v3  ;;  %2590 = vmatpush.bf16.msra.mxu3 %v4018_v5 }
 0x1e5   :  { %2603 = vmatpush.bf16.msra.mxu0 %v4026_v6 }
 0x1e6   :  { %2565 = vmatpush.bf16.msra.mxu1 %v4001_v8  ;;  %2559 = vmatmul.bf16.vlgmr.msrb.gmra.mxu0 %v1375_v15 }
 0x1e8   :  { %2578 = vmatpush.bf16.msra.mxu2 %v4009_v11  ;;  %2591 = vmatpush.bf16.msra.mxu3 %v4017_v13 }
 0x1e9   :  { %2604 = vmatpush.bf16.msra.mxu0 %v4025_v14 }
 0x1ea   :  { %2566 = vmatpush.bf16.msra.mxu1 %v4000_v16 }
 0x1ec   :  { %2579 = vmatpush.bf16.msra.mxu2 %v4008_v17  ;;  %2592 = vmatpush.bf16.msra.mxu3 %v4016_v18 }
 0x1ed   :  { %2605 = vmatpush.bf16.msra.mxu0 %v4024_v24  ;;  %v4029_v24 = vld [vmem:[%s4960_s7 + $0x10] sm:$0xff] }
 0x1ee   :  { %2567 = vmatpush.bf16.msra.mxu1 %v3999_v19 }
 0x1f0   :  { %2580 = vmatpush.bf16.msra.mxu2 %v4007_v23  ;;  %2593 = vmatpush.bf16.msra.mxu3 %v4015_v25 }
 0x1f1   :  { %2606 = vmatpush.bf16.msra.mxu0 %v4023_v26  ;;  %v4028_v26 = vld [vmem:[%s4960_s7 + $0x8] sm:$0xff] }
 0x1f2   :  { %2568 = vmatpush.bf16.msra.mxu1 %v3998_v30 }
 0x1f4   :  { %2581 = vmatpush.bf16.msra.mxu2 %v4006_v33  ;;  %2594 = vmatpush.bf16.msra.mxu3 %v4014_v34  ;;  %v4042_v33 = vld [vmem:[%s4961_s9 + $0x38] sm:$0xff] }
 0x1f5   :  { %2607 = vmatpush.bf16.msra.mxu0 %v4022_v58  ;;  %v4041_v58 = vld [vmem:[%s4961_s9 + $0x30] sm:$0xff] }
 0x1f6   :  { %2569 = vmatpush.bf16.msra.mxu1 %v3997_v35 }
 0x1f8   :  { %2582 = vmatpush.bf16.msra.mxu2 %v4005_v37  ;;  %2595 = vmatpush.bf16.msra.mxu3 %v4013_v39  ;;  %v4039_v39 = vld [vmem:[%s4961_s9 + $0x20] sm:$0xff] }
 0x1f9   :  { %2608 = vmatpush.bf16.msra.mxu0 %v4021_v40 }
 0x1fa   :  { %2570 = vmatpush.bf16.msra.mxu1 %v3996_v43 }
 0x1fc   :  { %2583 = vmatpush.bf16.msra.mxu2 %v4004_v44  ;;  %2596 = vmatpush.bf16.msra.mxu3 %v4012_v46  ;;  %v4038_v44 = vld [vmem:[%s4961_s9 + $0x18] sm:$0xff] }
 0x1fd   :  { %2609 = vmatpush.bf16.msra.mxu0 %v4020_v47  ;;  %v4037_v47 = vld [vmem:[%s4961_s9 + $0x10] sm:$0xff] }
 0x1fe   :  { %2571 = vmatpush.bf16.msra.mxu1 %v3995_v50 }
 0x200   :  { %2584 = vmatpush.bf16.msra.mxu2 %v4003_v21  ;;  %2597 = vmatpush.bf16.msra.mxu3 %v4011_v48 }
 0x201   :  { %2610 = vmatpush.bf16.msra.mxu0 %v4019_v51  ;;  %2572 = vmatmul.bf16.vlgmr.msra.gmra.mxu1 %v1376_v54 }
 0x202   :  { %2686 = vmatpush.bf16.msrb.mxu1 %v4034_v49  ;;  %v4055_v49 = vld [vmem:[%s4959_s8] ss:$0 sm:$0xff] }
 0x203   :  { %2585 = vmatmul.bf16.vlgmr.msra.gmra.mxu2 %v1377_v55  ;;  %2598 = vmatmul.bf16.vlgmr.msra.gmra.mxu3 %v1378_v56 }
 0x204   :  { %2611 = vmatmul.bf16.vlgmr.msra.gmra.mxu0 %v1379_v57  ;;  %2769 = vmatpush.bf16.msrb.mxu2 %v4042_v33 }
 0x206   :  { %2687 = vmatpush.bf16.msrb.mxu1 %v4033_v41 }
 0x208   :  { %2770 = vmatpush.bf16.msrb.mxu2 %v4041_v58 }
 0x20a   :  { %2688 = vmatpush.bf16.msrb.mxu1 %v4032_v4 }
 0x20c   :  { %2771 = vmatpush.bf16.msrb.mxu2 %v4040_v36 }
 0x20e   :  { %2689 = vmatpush.bf16.msrb.mxu1 %v4031_v9 }
 0x210   :  { %2772 = vmatpush.bf16.msrb.mxu2 %v4039_v39 }
 0x212   :  { %2690 = vmatpush.bf16.msrb.mxu1 %v4030_v12 }
 0x214   :  { %2773 = vmatpush.bf16.msrb.mxu2 %v4038_v44 }
 0x216   :  { %2691 = vmatpush.bf16.msrb.mxu1 %v4029_v24 }
 0x218   :  { %2774 = vmatpush.bf16.msrb.mxu2 %v4037_v47 }
 0x21a   :  { %2692 = vmatpush.bf16.msrb.mxu1 %v4028_v26 }
 0x21e   :  { %2693 = vmatpush.bf16.msrb.mxu1 %v4027_v28 }
 0x23d   :  { %v2417_v29 = vpop.f32.mrf.mxu1 }
 0x23e   :  { %v2418_v10 = vadd.f32 %v4054_v42, %v2417_v29  ;;  %v4056_v42 = vld [vmem:[%s4962_s10] ss:$0 sm:$0xff] }
 0x240   :  { %v2456_v59 = vpop.f32.mrf.mxu0 }
 0x245   :  { %v2419_v61 = vpop.f32.mrf.mxu1  ;;  %v2430_v62 = vpop.f32.mrf.mxu2 }
 0x246   :  { %v2443_v63 = vpop.f32.mrf.mxu3  ;;  %v2431_v13 = vadd.f32 %v2430_v62, %v2418_v10  ;;  %v4035_v61 = vld [vmem:[%s4961_s9] sm:$0xff]  ;;  %v4050_v62 = vld [vmem:[%s4963_s11 + $0x38] sm:$0xff] }
 0x247   :  { %2852 = vmatpush.bf16.msrb.mxu3 %v4050_v62 }
 0x248   :  { %v2458_v31 = vpop.f32.mrf.mxu0  ;;  %v2444_v16 = vadd.f32 %v2443_v63, %v2431_v13  ;;  %v4049_v63 = vld [vmem:[%s4963_s11 + $0x30] sm:$0xff]  ;;  %v4057_v13 = vld [vmem:[%s4964_s12] ss:$0 sm:$0xff] }
 0x249   :  { %v4048_v31 = vld [vmem:[%s4963_s11 + $0x28] sm:$0xff] }
 0x24a   :  { %v2457_v19 = vadd.f32 %v2456_v59, %v2444_v16  ;;  %v4036_v59 = vld [vmem:[%s4961_s9 + $0x8] sm:$0xff] }
 0x24b   :  { %2775 = vmatpush.bf16.msrb.mxu2 %v4036_v59  ;;  %2853 = vmatpush.bf16.msrb.mxu3 %v4049_v63 }
 0x24d   :  { %v2432_v0 = vpop.f32.mrf.mxu2 }
 0x24e   :  { %v2445_v1 = vpop.f32.mrf.mxu3  ;;  %v2469_v32 = vpop.f32.mrf.mxu1  ;;  %v4047_v0 = vld [vmem:[%s4963_s11 + $0x20] sm:$0xff] }
 0x24f   :  { %v2470_v23 = vadd.f32 %v2469_v32, %v2457_v19  ;;  %2776 = vmatpush.bf16.msrb.mxu2 %v4035_v61  ;;  %2854 = vmatpush.bf16.msrb.mxu3 %v4048_v31  ;;  %v4046_v1 = vld [vmem:[%s4963_s11 + $0x18] sm:$0xff]  ;;  %v4045_v32 = vld [vmem:[%s4963_s11 + $0x10] sm:$0xff] }
 0x250   :  { %v2508_v2 = vpop.f32.mrf.mxu0 }
 0x253   :  { %2855 = vmatpush.bf16.msrb.mxu3 %v4047_v0 }
 0x255   :  { %v2482_v3 = vpop.f32.mrf.mxu2 }
 0x256   :  { %v2471_v5 = vpop.f32.mrf.mxu1  ;;  %v2495_v6 = vpop.f32.mrf.mxu3  ;;  %v2483_v27 = vadd.f32 %v2482_v3, %v2470_v23 }
 0x257   :  { %2856 = vmatpush.bf16.msrb.mxu3 %v4046_v1 }
 0x258   :  { %v2510_v7 = vpop.f32.mrf.mxu0  ;;  %v2496_v34 = vadd.f32 %v2495_v6, %v2483_v27  ;;  %v4044_v6 = vld [vmem:[%s4963_s11 + $0x8] sm:$0xff] }
 0x259   :  { %v4043_v7 = vld [vmem:[%s4963_s11] sm:$0xff] }
 0x25a   :  { %v2509_v35 = vadd.f32 %v2508_v2, %v2496_v34 }
 0x25b   :  { %2857 = vmatpush.bf16.msrb.mxu3 %v4045_v32 }
 0x25d   :  { %v2484_v8 = vpop.f32.mrf.mxu2 }
 0x25e   :  { %v2497_v11 = vpop.f32.mrf.mxu3  ;;  %v2521_v14 = vpop.f32.mrf.mxu1 }
 0x25f   :  { %v2522_v37 = vadd.f32 %v2521_v14, %v2509_v35  ;;  %2858 = vmatpush.bf16.msrb.mxu3 %v4044_v6 }
 0x263   :  { %v2560_v15 = vpop.f32.mrf.mxu0  ;;  %2859 = vmatpush.bf16.msrb.mxu3 %v4043_v7 }
 0x266   :  { %v2534_v17 = vpop.f32.mrf.mxu2  ;;  %v2547_v18 = vpop.f32.mrf.mxu3 }
 0x267   :  { %v2523_v20 = vpop.f32.mrf.mxu1  ;;  %v2535_v38 = vadd.f32 %v2534_v17, %v2522_v37 }
 0x269   :  { %v2548_v40 = vadd.f32 %v2547_v18, %v2535_v38 }
 0x26b   :  { %v2562_v25 = vpop.f32.mrf.mxu0  ;;  %v2561_v46 = vadd.f32 %v2560_v15, %v2548_v40 }
 0x26e   :  { %v2536_v30 = vpop.f32.mrf.mxu2  ;;  %v2549_v60 = vpop.f32.mrf.mxu3 }
 0x27e   :  { %v2573_v43 = vpop.f32.mrf.mxu1 }
 0x27f   :  { %v2574_v50 = vadd.f32 %v2573_v43, %v2561_v46 }
 0x281   :  { %v2612_v45 = vpop.f32.mrf.mxu0 }
 0x286   :  { %v2586_v21 = vpop.f32.mrf.mxu2  ;;  %v2575_v48 = vpop.f32.mrf.mxu1 }
 0x287   :  { %v2587_v51 = vadd.f32 %v2586_v21, %v2574_v50  ;;  %v2599_v52 = vpop.f32.mrf.mxu3 }
 0x289   :  { %v2600_v22 = vadd.f32 %v2599_v52, %v2587_v51  ;;  %v2614_v53 = vpop.f32.mrf.mxu0 }
 0x28b   :  { %v2613_v54 = vadd.f32 %v2612_v45, %v2600_v22 }
 0x28d   :  { %v2616_v55 = vmax.f32 %v2613_v54, 0.0 }
 0x28e   :  { %v2588_v56 = vpop.f32.mrf.mxu2 }
 0x28f   :  { %v2634_v57 = vpack.c.bf16 %v2616_v55, %v2616_v55  ;;  %v2601_v29 = vpop.f32.mrf.mxu3 }
 0x291   :  { %2694 = vmatmul.bf16.vlgmr.msrb.gmra.mxu1 %v2634_v57 }
 0x30e   :  { %v2695_v2 = vpop.f32.mrf.mxu1 }
 0x30f   :  { %v2696_v41 = vadd.f32 %v4055_v49, %v2695_v2 }
 0x311   :  { %v2699_v3 = vmax.f32 %v2696_v41, 0.0 }
 0x313   :  { %v2717_v4 = vpack.c.bf16 %v2699_v3, %v2699_v3 }
 0x315   :  { %2777 = vmatmul.bf16.vlgmr.msrb.gmra.mxu2 %v2717_v4 }
 0x316   :  { %v2697_v5 = vpop.f32.mrf.mxu1 }
 0x398   :  { %v2778_v8 = vpop.f32.mrf.mxu2 }
 0x399   :  { %v2779_v9 = vadd.f32 %v4056_v42, %v2778_v8 }
 0x39b   :  { %v2782_v10 = vmax.f32 %v2779_v9, 0.0 }
 0x39d   :  { %v2800_v11 = vpack.c.bf16 %v2782_v10, %v2782_v10 }
 0x39f   :  { %2860 = vmatmul.bf16.vlgmr.msrb.gmra.mxu3 %v2800_v11 }
 0x3a0   :  { %v2780_v12 = vpop.f32.mrf.mxu2 }
 0x422   :  { %v2861_v14 = vpop.f32.mrf.mxu3 }
 0x423   :  { %v2862_v15 = vadd.f32 %v4057_v13, %v2861_v14 }
 0x425   :  { %2865 = vst [vmem:[%s4965_s13] sm:$0x3] %v2862_v15 }
 0x42a   :  { %v2863_v16 = vpop.f32.mrf.mxu3 }

</bundles_post_ra>
